<compile_context>
chip_gen: v5e
topology: v5e:2x2
jax: 0.10.0
libtpu: 0.0.40
codegen_flags: <defaults>
</compile_context>

<pallas_src>
import numpy as np
import jax
import jax.numpy as jnp
from jax.experimental import pallas as pl
from jax.experimental.pallas import tpu as pltpu


K_IN = 28 * 28          # 784
K_PAD = 896             # 7 * 128  (zero-padded contraction dim for layer 1)
H1 = 512
N_OUT = 10
N_PAD = 128             # lane-dense padded output dim for layers 2 & 3


# ---------------------------------------------------------------------------
# Pallas kernel: fused 3-layer sparse MLP (masks pre-folded, dims pre-padded)
# ---------------------------------------------------------------------------
def sparse_mlp_kernel(x_ref, w1_ref, b1_ref, w2_ref, b2_ref, w3_ref, b3_ref,
                      o_ref):
    x = x_ref[...]                                            # (TB, 896) bf16

    # Layer 1: (masked, folded) linear + ReLU; bf16 x bf16 -> f32 on MXU
    h1 = jnp.dot(x, w1_ref[...],
                 preferred_element_type=jnp.float32) + b1_ref[...]
    h1 = jnp.maximum(h1, 0.0)                                 # (TB, 512) f32

    # Layer 2: (masked, folded) linear + ReLU (N padded to 128 lanes)
    h2 = jnp.dot(h1, w2_ref[...],
                 preferred_element_type=jnp.float32) + b2_ref[...]
    h2 = jnp.maximum(h2, 0.0)                                 # (TB, 128) f32

    # Layer 3: anti-mask-fitted weight, full (unmasked) linear, no ReLU
    out = jnp.dot(h2, w3_ref[...],
                  preferred_element_type=jnp.float32) + b3_ref[...]
    o_ref[...] = out                                          # (TB, 128) f32


def sparse_mlp_forward(x_flat, w1t, b1, w2t, b2, w3t, b3, *, tb=None):
    """x_flat: (B, K_PAD) bf16. Returns (B, N_PAD) f32."""
    B = x_flat.shape[0]
    if tb is None:
        tb = 128 if B >= 128 else 8
    # Pad batch to a multiple of the batch tile (zeros are harmless).
    Bp = pl.cdiv(B, tb) * tb
    if Bp != B:
        x_flat = jnp.pad(x_flat, ((0, Bp - B), (0, 0)))

    grid_spec = pltpu.PrefetchScalarGridSpec(
        num_scalar_prefetch=0,
        grid=(Bp // tb,),
        in_specs=[
            pl.BlockSpec((tb, K_PAD), lambda i: (i, 0)),       # x tile
            pl.BlockSpec((K_PAD, H1), lambda i: (0, 0)),       # w1t (resident)
            pl.BlockSpec((1, H1), lambda i: (0, 0)),           # b1
            pl.BlockSpec((H1, N_PAD), lambda i: (0, 0)),       # w2t
            pl.BlockSpec((1, N_PAD), lambda i: (0, 0)),        # b2
            pl.BlockSpec((N_PAD, N_PAD), lambda i: (0, 0)),    # w3t
            pl.BlockSpec((1, N_PAD), lambda i: (0, 0)),        # b3
        ],
        out_specs=pl.BlockSpec((tb, N_PAD), lambda i: (i, 0)),
    )
    out = pl.pallas_call(
        sparse_mlp_kernel,
        out_shape=jax.ShapeDtypeStruct((Bp, N_PAD), jnp.float32),
        grid_spec=grid_spec,
        compiler_params=pltpu.CompilerParams(
            dimension_semantics=("parallel",)),
    )(x_flat, w1t, b1, w2t, b2, w3t, b3)
    return out[:B]


# ---------------------------------------------------------------------------
# Deterministic parameter construction (mimics nn.Linear init + torch.rand masks)
# ---------------------------------------------------------------------------
def linear_init(key, out_f, in_f):
    kw, kb = jax.random.split(key)
    bound = 1.0 / np.sqrt(in_f)
    w = jax.random.uniform(kw, (out_f, in_f), jnp.float32, -bound, bound)
    b = jax.random.uniform(kb, (out_f,), jnp.float32, -bound, bound)
    return w, b


def build_params(key, sparsity=0.5):
    keys = jax.random.split(key, 6)
    w1, b1 = linear_init(keys[0], H1, K_IN)          # Linear(784, 512)
    w2, b2 = linear_init(keys[1], N_OUT, H1)         # Linear(512, 10)
    w3, b3 = linear_init(keys[2], N_OUT, N_OUT)      # Linear(10, 10)
    mask1 = jax.random.uniform(keys[3], (H1, K_IN)) > sparsity
    mask2 = jax.random.uniform(keys[4], (N_OUT, H1)) > sparsity
    mask3 = jax.random.uniform(keys[5], (N_OUT, N_OUT)) > sparsity

    # --- anti-mask fitting (parameter glue, done once on host) ---
    # TODO(synk): data-dependent row-major gather/scatter on parameters; done in
    # numpy once at build time rather than inside the kernel.
    w1_np = np.asarray(w1)
    w3_np = np.asarray(w3).copy()
    anti1 = ~np.asarray(mask1)                       # sparseAntiMasks[0]
    anti3 = ~np.asarray(mask3)                       # sparseAntiMasks[1]
    anti_weights = anti1 * w1_np
    help_vals = anti_weights[anti_weights != 0]      # row-major nonzeros
    tgt = np.argwhere(anti3)                         # row-major True positions
    n_fill = min(len(tgt), len(help_vals))
    for k in range(n_fill):
        i, j = tgt[k]
        w3_np[i, j] = help_vals[k]

    # --- fold masks, transpose to (in, out), pad, cast weights to bf16 ---
    w1_masked = np.asarray(w1) * np.asarray(mask1, np.float32)   # (512, 784)
    w2_masked = np.asarray(w2) * np.asarray(mask2, np.float32)   # (10, 512)

    w1t = np.zeros((K_PAD, H1), np.float32)
    w1t[:K_IN, :] = w1_masked.T
    w2t = np.zeros((H1, N_PAD), np.float32)
    w2t[:, :N_OUT] = w2_masked.T
    w3t = np.zeros((N_PAD, N_PAD), np.float32)
    w3t[:N_OUT, :N_OUT] = w3_np.T

    b1p = np.asarray(b1).reshape(1, H1)
    b2p = np.zeros((1, N_PAD), np.float32)
    b2p[0, :N_OUT] = np.asarray(b2)
    b3p = np.zeros((1, N_PAD), np.float32)
    b3p[0, :N_OUT] = np.asarray(b3)

    return dict(
        w1t=jnp.asarray(w1t, jnp.bfloat16),   # (896, 512) masked, padded
        b1=jnp.asarray(b1p, jnp.float32),     # (1, 512)
        w2t=jnp.asarray(w2t, jnp.bfloat16),   # (512, 128) masked, padded
        b2=jnp.asarray(b2p, jnp.float32),     # (1, 128)
        w3t=jnp.asarray(w3t, jnp.bfloat16),   # (128, 128) fitted, padded
        b3=jnp.asarray(b3p, jnp.float32),     # (1, 128)
    )


def _flatten_and_pad(x_nchw):
    B = x_nchw.shape[0]
    x_flat = x_nchw.reshape(B, -1).astype(jnp.float32)           # (B, 784)
    x_flat = jnp.pad(x_flat, ((0, 0), (0, K_PAD - K_IN)))        # (B, 896)
    return x_flat.astype(jnp.bfloat16)


def model_forward(x_nchw, params):
    x_flat = _flatten_and_pad(x_nchw)
    out = sparse_mlp_forward(
        x_flat,
        params["w1t"], params["b1"],
        params["w2t"], params["b2"],
        params["w3t"], params["b3"],
    )
    return out[:, :N_OUT]


# ---------------------------------------------------------------------------
# Pure-JAX reference (same bf16 weights / compute order) for a sanity check
# ---------------------------------------------------------------------------
def reference_forward(x_nchw, params):
    x = _flatten_and_pad(x_nchw)
    h1 = jnp.dot(x, params["w1t"],
                 preferred_element_type=jnp.float32) + params["b1"]
    h1 = jnp.maximum(h1, 0.0)
    h2 = jnp.dot(h1, params["w2t"],
                 preferred_element_type=jnp.float32) + params["b2"]
    h2 = jnp.maximum(h2, 0.0)
    out = jnp.dot(h2, params["w3t"],
                  preferred_element_type=jnp.float32) + params["b3"]
    return out[:, :N_OUT]


if __name__ == "__main__":
    key = jax.random.PRNGKey(0)
    k_param, k_x = jax.random.split(key)

    params = build_params(k_param)

    # MNIST-style input, NCHW: (batch=16, channels=1, 28, 28)
    x = jax.random.normal(k_x, (16, 1, 28, 28), jnp.float32)

    logits = model_forward(x, params)
    jax.block_until_ready(logits)

    ref = reference_forward(x, params)
    np.testing.assert_allclose(np.asarray(logits), np.asarray(ref),
                               rtol=1e-3, atol=1e-3)

    assert logits.shape == (16, 10)
    print("KERNEL_OK")
</pallas_src>

<mosaic_0001>
module attributes {stable_mosaic.version = 11 : i64} {
  func.func @sparse_mlp_kernel(%arg0: i32, %arg1: memref<8x896xbf16, #tpu.memory_space<vmem>>, %arg2: memref<896x512xbf16, #tpu.memory_space<vmem>>, %arg3: memref<1x512xf32, #tpu.memory_space<vmem>>, %arg4: memref<512x128xbf16, #tpu.memory_space<vmem>>, %arg5: memref<1x128xf32, #tpu.memory_space<vmem>>, %arg6: memref<128x128xbf16, #tpu.memory_space<vmem>>, %arg7: memref<1x128xf32, #tpu.memory_space<vmem>>, %arg8: memref<8x128xf32, #tpu.memory_space<vmem>>) attributes {dimension_semantics = [#tpu.dimension_semantics<parallel>], iteration_bounds = array<i64: 2>, scalar_prefetch = 0 : i64, scratch_operands = 0 : i64, tpu.core_type = #tpu.core_type<tc>, window_params = [{transform_indices = @transform_0, window_bounds = array<i64: 8, 896>}, {pipeline_mode = #tpu.pipeline_mode<synchronous>, transform_indices = @transform_1, window_bounds = array<i64: 896, 512>}, {pipeline_mode = #tpu.pipeline_mode<synchronous>, transform_indices = @transform_2, window_bounds = array<i64: 1, 512>}, {pipeline_mode = #tpu.pipeline_mode<synchronous>, transform_indices = @transform_3, window_bounds = array<i64: 512, 128>}, {pipeline_mode = #tpu.pipeline_mode<synchronous>, transform_indices = @transform_4, window_bounds = array<i64: 1, 128>}, {pipeline_mode = #tpu.pipeline_mode<synchronous>, transform_indices = @transform_5, window_bounds = array<i64: 128, 128>}, {pipeline_mode = #tpu.pipeline_mode<synchronous>, transform_indices = @transform_6, window_bounds = array<i64: 1, 128>}, {transform_indices = @transform_7, window_bounds = array<i64: 8, 128>}]} {
    %c0 = arith.constant 0 : index
    %c0_0 = arith.constant 0 : index
    %0 = vector.load %arg1[%c0, %c0_0] : memref<8x896xbf16, #tpu.memory_space<vmem>>, vector<8x896xbf16>
    %c0_1 = arith.constant 0 : index
    %c0_2 = arith.constant 0 : index
    %1 = vector.load %arg2[%c0_1, %c0_2] : memref<896x512xbf16, #tpu.memory_space<vmem>>, vector<896x512xbf16>
    %cst = arith.constant dense<0.000000e+00> : vector<8x512xf32>
    %2 = tpu.matmul %0, %1, %cst {dimension_numbers = #tpu.dot_dimension_numbers<[1], [0], [0], [1], [0, 0, 1, 1], [], []>} : vector<8x896xbf16>, vector<896x512xbf16>, vector<8x512xf32> -> vector<8x512xf32>
    %c0_3 = arith.constant 0 : index
    %c0_4 = arith.constant 0 : index
    %3 = vector.load %arg3[%c0_3, %c0_4] : memref<1x512xf32, #tpu.memory_space<vmem>>, vector<1x512xf32>
    %4 = vector.broadcast %3 : vector<1x512xf32> to vector<8x512xf32>
    %5 = arith.addf %2, %4 : vector<8x512xf32>
    %cst_5 = arith.constant 0.000000e+00 : f32
    %6 = vector.broadcast %cst_5 : f32 to vector<8x512xf32>
    %7 = arith.maximumf %5, %6 : vector<8x512xf32>
    %c0_6 = arith.constant 0 : index
    %c0_7 = arith.constant 0 : index
    %8 = vector.load %arg4[%c0_6, %c0_7] : memref<512x128xbf16, #tpu.memory_space<vmem>>, vector<512x128xbf16>
    %cst_8 = arith.constant dense<0.000000e+00> : vector<8x128xf32>
    %9 = tpu.matmul %7, %8, %cst_8 {dimension_numbers = #tpu.dot_dimension_numbers<[1], [0], [0], [1], [0, 0, 1, 1], [], []>} : vector<8x512xf32>, vector<512x128xbf16>, vector<8x128xf32> -> vector<8x128xf32>
    %c0_9 = arith.constant 0 : index
    %c0_10 = arith.constant 0 : index
    %10 = vector.load %arg5[%c0_9, %c0_10] : memref<1x128xf32, #tpu.memory_space<vmem>>, vector<1x128xf32>
    %11 = vector.broadcast %10 : vector<1x128xf32> to vector<8x128xf32>
    %12 = arith.addf %9, %11 : vector<8x128xf32>
    %cst_11 = arith.constant 0.000000e+00 : f32
    %13 = vector.broadcast %cst_11 : f32 to vector<8x128xf32>
    %14 = arith.maximumf %12, %13 : vector<8x128xf32>
    %c0_12 = arith.constant 0 : index
    %c0_13 = arith.constant 0 : index
    %15 = vector.load %arg6[%c0_12, %c0_13] : memref<128x128xbf16, #tpu.memory_space<vmem>>, vector<128x128xbf16>
    %cst_14 = arith.constant dense<0.000000e+00> : vector<8x128xf32>
    %16 = tpu.matmul %14, %15, %cst_14 {dimension_numbers = #tpu.dot_dimension_numbers<[1], [0], [0], [1], [0, 0, 1, 1], [], []>} : vector<8x128xf32>, vector<128x128xbf16>, vector<8x128xf32> -> vector<8x128xf32>
    %c0_15 = arith.constant 0 : index
    %c0_16 = arith.constant 0 : index
    %17 = vector.load %arg7[%c0_15, %c0_16] : memref<1x128xf32, #tpu.memory_space<vmem>>, vector<1x128xf32>
    %18 = vector.broadcast %17 : vector<1x128xf32> to vector<8x128xf32>
    %19 = arith.addf %16, %18 : vector<8x128xf32>
    %c0_17 = arith.constant 0 : index
    %c0_18 = arith.constant 0 : index
    %20 = vector.load %arg8[%c0_17, %c0_18] : memref<8x128xf32, #tpu.memory_space<vmem>>, vector<8x128xf32>
    tpu.vector_store %arg8[%c0_17, %c0_18], %19 {strides = array<i32>} : memref<8x128xf32, #tpu.memory_space<vmem>>, vector<8x128xf32>,
    return
  }
  func.func @transform_0(%arg0: i32) -> (i32, i32) {
    %c0_i32 = arith.constant 0 : i32
    %c0_i32_0 = arith.constant 0 : i32
    return %arg0, %c0_i32 : i32, i32
  }
  func.func @transform_1(%arg0: i32) -> (i32, i32) {
    %c0_i32 = arith.constant 0 : i32
    %c0_i32_0 = arith.constant 0 : i32
    %c0_i32_1 = arith.constant 0 : i32
    return %c0_i32, %c0_i32_0 : i32, i32
  }
  func.func @transform_2(%arg0: i32) -> (i32, i32) {
    %c0_i32 = arith.constant 0 : i32
    %c0_i32_0 = arith.constant 0 : i32
    %c0_i32_1 = arith.constant 0 : i32
    return %c0_i32, %c0_i32_0 : i32, i32
  }
  func.func @transform_3(%arg0: i32) -> (i32, i32) {
    %c0_i32 = arith.constant 0 : i32
    %c0_i32_0 = arith.constant 0 : i32
    %c0_i32_1 = arith.constant 0 : i32
    return %c0_i32, %c0_i32_0 : i32, i32
  }
  func.func @transform_4(%arg0: i32) -> (i32, i32) {
    %c0_i32 = arith.constant 0 : i32
    %c0_i32_0 = arith.constant 0 : i32
    %c0_i32_1 = arith.constant 0 : i32
    return %c0_i32, %c0_i32_0 : i32, i32
  }
  func.func @transform_5(%arg0: i32) -> (i32, i32) {
    %c0_i32 = arith.constant 0 : i32
    %c0_i32_0 = arith.constant 0 : i32
    %c0_i32_1 = arith.constant 0 : i32
    return %c0_i32, %c0_i32_0 : i32, i32
  }
  func.func @transform_6(%arg0: i32) -> (i32, i32) {
    %c0_i32 = arith.constant 0 : i32
    %c0_i32_0 = arith.constant 0 : i32
    %c0_i32_1 = arith.constant 0 : i32
    return %c0_i32, %c0_i32_0 : i32, i32
  }
  func.func @transform_7(%arg0: i32) -> (i32, i32) {
    %c0_i32 = arith.constant 0 : i32
    %c0_i32_0 = arith.constant 0 : i32
    return %arg0, %c0_i32 : i32, i32
  }
}

</mosaic_0001>

<bundles_post_ra>
// kernel: tpu_custom_call.1
= control target key start
LH: loop header
LB: loop body
LE: loop exit
PB: predicated region body
PF: predicated region fallthrough
CT: control target
= control target key end

     0   :  { %s4580_s0 = inlined_call_operand.hbm [shape: bf16[16,896], index: 0, kind: input, shape index: {}]   ;;  %s4581_s1 = inlined_call_operand.hbm [shape: bf16[896,512], index: 1, kind: input, shape index: {}]   ;;  %s4582_s2 = inlined_call_operand.hbm [shape: f32[1,512], index: 2, kind: input, shape index: {}]   ;;  %s4583_s3 = inlined_call_operand.hbm [shape: bf16[512,128], index: 3, kind: input, shape index: {}]   ;;  %s4584_s4 = inlined_call_operand.vmem [shape: f32[1,128], index: 4, kind: input, shape index: {}]   ;;  %s4585_s5 = inlined_call_operand.hbm [shape: bf16[128,128], index: 5, kind: input, shape index: {}]   ;;  %s4586_s6 = inlined_call_operand.vmem [shape: f32[1,128], index: 6, kind: input, shape index: {}]   ;;  %s4587_s7 = inlined_call_operand.hbm [shape: f32[16,128], index: 7, kind: output, shape index: {}]  }
   0x1   :  { %4588 = sst [smem:[#allocation16_spill]] %s4581_s1 }
   0x2   :  { %4589 = sst [smem:[#allocation17_spill]] %s4582_s2 }
   0x3   :  { %4590 = sst [smem:[#allocation18_spill]] %s4583_s3 }
   0x4   :  { %12 = vsyncpa [#allocation3], 0 }
   0x5   :  { %14 = vsyncpa [#allocation3 + $0x1], 0 }
   0x6   :  { %15 = vsyncpa [#allocation6], 0 }
   0x7   :  { %16 = vsyncpa [#allocation9], 0 }
   0x8   :  { %17 = vsyncpa [#allocation4], 0 }
   0x9   :  { %19 = vsyncpa [#allocation4 + $0x1], 0  ;;  %s4334_s24 = smov 0   ;;  %s4336_s25 = smov 0  }
   0xa   :  { %s4338_s26 = smov 0   ;;  %s4340_s27 = smov 0  }
   0xb LB: > { %s4591_s1 = sld [smem:[#allocation16_spill]]  ;;  %s4358_s8 = sadd.s32 4294967295, %s4284_s27   ;;  %s4284_s27 = sphi %s4340_s27, %s4604_s27   ;;  %s4280_s26 = sphi %s4338_s26, %s4603_s26   ;;  %s4276_s25 = sphi %s4336_s25, %s4602_s25   ;;  %s4272_s24 = sphi %s4334_s24, %s4601_s24  }
   0xc   : > { %p2627_p0 = scmp.ge.s32.totalorder %s4284_s27, 1  ;;  %p46_p1 = scmp.eq.s32.totalorder %s4358_s8, 0 }
   0xd   : > { %p208_p2 = scmp.lt.s32.totalorder %s4284_s27, 3  ;;  %s4286_s10 = smov [#allocation5]  }
   0xe   : > { %s221_s11 = sshll.u32 %s4286_s10, 4  ;;  %s4593_s3 = sld [smem:[#allocation18_spill]]  ;;  %s222_s11 = int_to_ptr.vmem [resolvable:$true] %s221_s11 }
   0xf   : > { %p4363_p3 = pnand %p2627_p0, %p208_p2  ;;  %s4287_s16 = smov [#allocation8]  }
  0x10   : > { %s247_s17 = sshll.u32 %s4287_s16, 4  ;;  %s4288_s18 = smov 256   ;;  %s248_s17 = int_to_ptr.vmem [resolvable:$true] %s247_s17 }
  0x11   : > { %s219_s30 = sshll.u32 %s4591_s1, 4  ;;  %p3987_p4 = pneg %p4363_p3  ;;  %s220_s30 = int_to_ptr.hbm [resolvable:$true] %s219_s30 }
  0x12   : > { %s4289_s19 = smov 16   ;;  %s4290_s20 = smov 64  }
  0x13   : > { %p4375_p6 = pnand %p3987_p4, %p46_p1  ;;  %s4291_s21 = smov 4  }
  0x14   : > { %s245_s14 = sshll.u32 %s4593_s3, 4  ;;  %s4595_s2 = sld [smem:[#allocation17_spill]]  ;;  %s246_s14 = int_to_ptr.hbm [resolvable:$true] %s245_s14 }
  0x15   : > { %3990 = dma.hbm_to_vmem [thread:$0]  (!%p4375_p6), %s220_s30, 28672, %s222_s11, [#allocation6], %s4288_s18, %s4288_s18, %s4289_s19  }
  0x16   : > { %3996 = dma.hbm_to_vmem [thread:$0]  (!%p4375_p6), %s246_s14, 4096, %s248_s17, [#allocation9], %s4290_s20, %s4290_s20, %s4291_s21  }
  0x17   : > { %s4292_s29 = smov [#allocation7]   ;;  %s262_s12 = sshll.u32 %s4585_s5, 4  ;;  %s263_s12 = int_to_ptr.hbm [resolvable:$true] %s262_s12 }
  0x18   : > { %s236_s30 = sshll.u32 %s4292_s29, 4  ;;  %s4293_s13 = smov [#allocation10]   ;;  %s237_s30 = int_to_ptr.vmem [resolvable:$true] %s236_s30 }
  0x19   : > { %s264_s14 = sshll.u32 %s4293_s13, 4  ;;  %s2626_s16 = sadd.s32 4294967294, %s4284_s27   ;;  %s265_s14 = int_to_ptr.vmem [resolvable:$true] %s264_s14 }
  0x1a   : > { %s234_s28 = sshll.u32 %s4595_s2, 4  ;;  %s4395_s17 = sadd.s32 1, %s4284_s27   ;;  %s235_s28 = int_to_ptr.hbm [resolvable:$true] %s234_s28 }
  0x1b   : > { %3993 = dma.hbm_to_vmem [thread:$0]  (!%p4375_p6), %s235_s28, 64, %s237_s30, [#allocation6]  }
  0x1c   : > { %3999 = dma.hbm_to_vmem [thread:$0]  (!%p4375_p6), %s263_s12, 1024, %s265_s14, [#allocation9], %s4290_s20, %s4290_s20, %s4291_s21  }
  0x1d   : > { %s29_s18 = ssub.s32 %s4284_s27, %s4395_s17  ;;  %s32_s19 = sadd.s32 1, %s4280_s26 }
  0x1e   : > { %p30_p7 = scmp.eq.s32.totalorder %s29_s18, 0  ;;  %p39_p8 = scmp.ne.s32.totalorder %s4280_s26, %s4276_s25 }
  0x1f   : > { %p40_p9 = scmp.eq.s32.totalorder %s4284_s27, 0  ;;  %p45_p10 = scmp.ne.s32.totalorder %s4276_s25, %s4272_s24 }
  0x20   : > { %s4406_s22 = scalar_select %p30_p7, %s4280_s26, %s32_s19  }
  0x21   : > { %p41_p11 = por %p40_p9, %p39_p8  ;;  %p4410_p12 = por %p46_p1, %p45_p10 }
  0x22   : > { %p195_p13 = scmp.eq.s32.totalorder %s4358_s8, 1  ;;  %p201_p0 = scmp.eq.s32.totalorder %s2626_s16, 1 }
  0x23   : > { %p4012_p2 = scmp.lt.s32.totalorder %s4284_s27, 2  ;;  %s281_s15 = sand.u32 1, %s4280_s26  }
  0x24   : > { %p4417_p4 = por %p195_p13, %p39_p8  ;;  %p4421_p6 = por %p201_p0, %p45_p10 }
  0x25   : > { %s3964_s28 = smul.u32 28, %s281_s15  ;;  %p4426_p7 = pnand %p4012_p2, %p41_p11 }
  0x26   : > { %s3965_s29 = smul.u32 28, %s4284_s27  ;;  %s282_s18 = scalar_lea.sflag [#allocation3], %s281_s15 }
  0x27   : > { %s285_s13 = scalar_lea.vmem [#allocation2], %s3964_s28  ;;  %p4184_p9 = pneg %p4426_p7 }
  0x28   : > { %s290_s12 = scalar_lea.hbm %s4580_s0, %s3965_s29  ;;  %s294_s14 = sshll.u32 %s285_s13, 4  ;;  %s295_s14 = int_to_ptr.vmem [resolvable:$true] %s294_s14 }
  0x29   : > { %s292_s16 = sshll.u32 %s290_s12, 4  ;;  %s4187_s10 = scalar_lea.hbm %s4580_s0, 56  ;;  %s293_s16 = int_to_ptr.hbm [resolvable:$true] %s292_s16 }
  0x2a   : > { %s4180_s19 = sshra.s32 %s293_s16, 4  ;;  %s4181_s19 = int_to_ptr.hbm [resolvable:$true] %s4180_s19 }
  0x2b   : > { %s4182_s1 = scalar_lea.hbm %s4181_s19, 28  ;;  %p4188_p13 = scmp.lt.s32.totalorder %s4181_s19, %s4580_s0 }
  0x2c   : > { %p4183_p8 = scmp.ne.s32.totalorder %s4181_s19, %s4182_s1  ;;  %p4189_p0 = scmp.lt.s32.totalorder %s4187_s10, %s4182_s1 }
  0x2e   : > { %p4185_p10 = pnand %p4184_p9, %p4183_p8  ;;  %p4190_p2 = por %p4189_p0, %p4188_p13 }
  0x30   : > { %p4186_p11 = pneg %p4185_p10 }
  0x32   : > { %p4191_p5 = pnand %p4190_p2, %p4186_p11 }
  0x34   : > { %4194 = shalt.err (!%p4191_p5)
}
  0x35   : > { %4003 = dma.hbm_to_vmem [thread:$0]  (!%p4426_p7), %s293_s16, 448, %s295_s14, %s282_s18  }
  0x36   : > { %303 = sbr.rel (%p4363_p3) target bundleno = 697 (0x2b9), region = 48  ;;  %s4446_s15 = sand.u32 (!%p4363_p3), 1, %s4276_s25  }
  0x37   : > { %s3966_s2 = smul.u32 (!%p4363_p3), 28, %s4446_s15  ;;  %s306_s3 = scalar_lea.sflag (!%p4363_p3), [#allocation3], %s4446_s15 }
  0x39   : > { %s4450_s28 = scalar_lea.vmem (!%p4363_p3), [#allocation2], %s3966_s2 }
  0x3b   : > { %4255 = dma.done.wait (%p4410_p12), %s306_s3, 448  }
  0x3c   : > { %4257 = vsyncadd (%p4410_p12), %s306_s3, 4294966848 }
  0x3d   : > { %4259 = dma.done.wait (%p46_p1), [#allocation6], 28736  }
  0x3e   : > { %4261 = vsyncadd (%p46_p1), [#allocation6], 4294938560 }
  0x3f   : > { %4263 = dma.done.wait (%p46_p1), [#allocation9], 5120  }
  0x40   : > { %4265 = vsyncadd (%p46_p1), [#allocation9], 4294962176  ;;  %v2754_v0 = vld [vmem:[#allocation5 + $0xe0] sm:$0xf]  ;;  %v3730_v1 = vld [vmem:[#allocation5 + $0xec] sm:$0xf0] }
  0x41   : > { %v2882_v2 = vld [vmem:[#allocation5 + $0x1e0] sm:$0xf]  ;;  %v2755_v3 = vor.u32 %v3730_v1, %v2754_v0  ;;  %v3762_v4 = vld [vmem:[#allocation5 + $0x1ec] sm:$0xf0]  ;;  %s2639_s23 = sshll.u32 %s4446_s15, 3  ;;  %s3697_s30 = sshll.u32 %s4358_s8, 3 }
  0x42   : > { %v3010_v5 = vld [vmem:[#allocation5 + $0x2e0] sm:$0xf]  ;;  %v3794_v6 = vld [vmem:[#allocation5 + $0x2ec] sm:$0xf0]  ;;  %v2883_v7 = vor.u32 %v3762_v4, %v2882_v2  ;;  %s2513_s14 = scalar_lea.hbm %s4587_s7, %s3697_s30  ;;  %s360_s19 = scalar_lea.vmem [#allocation11], %s2639_s23 }
  0x43   : > { %v3011_v8 = vor.u32 %v3794_v6, %v3010_v5  ;;  %v3138_v9 = vld [vmem:[#allocation5 + $0x3e0] sm:$0xf]  ;;  %v3826_v10 = vld [vmem:[#allocation5 + $0x3ec] sm:$0xf0]  ;;  %1744 = vmatpush.bf16.msra.mxu0 %v2755_v3  ;;  %s2515_s10 = sshll.u32 %s360_s19, 4  ;;  %s2517_s11 = sshll.u32 %s2513_s14, 4  ;;  %s2516_s10 = int_to_ptr.vmem [resolvable:$true] %s2515_s10  ;;  %s2518_s11 = int_to_ptr.hbm [resolvable:$true] %s2517_s11 }
  0x44   : > { %v2738_v11 = vld [vmem:[#allocation5 + $0xc0] sm:$0xf]  ;;  %v3139_v12 = vor.u32 %v3826_v10, %v3138_v9  ;;  %v3726_v13 = vld [vmem:[#allocation5 + $0xcc] sm:$0xf0]  ;;  %1757 = vmatpush.bf16.msra.mxu1 %v2883_v7  ;;  %s2503_s29 = scalar_lea.sflag [#allocation4], %s4446_s15  ;;  %s4224_s2 = sshra.s32 %s2518_s11, 4  ;;  %s4225_s2 = int_to_ptr.hbm [resolvable:$true] %s4224_s2 }
  0x45   : > { %v2866_v14 = vld [vmem:[#allocation5 + $0x1c0] sm:$0xf]  ;;  %v3758_v15 = vld [vmem:[#allocation5 + $0x1cc] sm:$0xf0]  ;;  %1770 = vmatpush.bf16.msra.mxu2 %v3011_v8  ;;  %v2739_v16 = vor.u32 %v3726_v13, %v2738_v11  ;;  %s4226_s8 = scalar_lea.hbm %s4225_s2, 8  ;;  %s4230_s1 = scalar_lea.hbm %s4587_s7, 16 }
  0x46   : > { %v2867_v17 = vor.u32 %v3758_v15, %v2866_v14  ;;  %v2994_v18 = vld [vmem:[#allocation5 + $0x2c0] sm:$0xf]  ;;  %v3790_v19 = vld [vmem:[#allocation5 + $0x2cc] sm:$0xf0]  ;;  %1783 = vmatpush.bf16.msra.mxu3 %v3139_v12  ;;  %p4227_p1 = scmp.ne.s32.totalorder %s4225_s2, %s4226_s8  ;;  %p4231_p12 = scmp.lt.s32.totalorder %s4225_s2, %s4587_s7 }
  0x47   : > { %v3122_v20 = vld [vmem:[#allocation5 + $0x3c0] sm:$0xf]  ;;  %v2995_v21 = vor.u32 %v3790_v19, %v2994_v18  ;;  %v3822_v22 = vld [vmem:[#allocation5 + $0x3cc] sm:$0xf0]  ;;  %1745 = vmatpush.bf16.msra.mxu0 %v2739_v16  ;;  %p4232_p7 = scmp.lt.s32.totalorder %s4230_s1, %s4226_s8 }
  0x48   : > { %v2722_v23 = vld [vmem:[#allocation5 + $0xa0] sm:$0xf]  ;;  %v3722_v24 = vld [vmem:[#allocation5 + $0xac] sm:$0xf0]  ;;  %v3123_v25 = vor.u32 %v3822_v22, %v3122_v20  ;;  %1758 = vmatpush.bf16.msra.mxu1 %v2867_v17  ;;  %p4228_p3 = pnand %p4227_p1, %p4417_p4 }
  0x49   : > { %v2850_v26 = vld [vmem:[#allocation5 + $0x1a0] sm:$0xf]  ;;  %v3754_v27 = vld [vmem:[#allocation5 + $0x1ac] sm:$0xf0]  ;;  %v2723_v29 = vor.u32 %v3722_v24, %v2722_v23  ;;  %1771 = vmatpush.bf16.msra.mxu2 %v2995_v21  ;;  %p4233_p8 = por %p4232_p7, %p4231_p12 }
  0x4a   : > { %v2978_v28 = vld [vmem:[#allocation5 + $0x2a0] sm:$0xf]  ;;  %v3786_v30 = vld [vmem:[#allocation5 + $0x2ac] sm:$0xf0]  ;;  %v2851_v33 = vor.u32 %v3754_v27, %v2850_v26  ;;  %1784 = vmatpush.bf16.msra.mxu3 %v3123_v25  ;;  %p4229_p5 = pneg %p4228_p3 }
  0x4b   : > { %v3106_v31 = vld [vmem:[#allocation5 + $0x3a0] sm:$0xf]  ;;  %v3818_v32 = vld [vmem:[#allocation5 + $0x3ac] sm:$0xf0]  ;;  %v2979_v34 = vor.u32 %v3786_v30, %v2978_v28  ;;  %1746 = vmatpush.bf16.msra.mxu0 %v2723_v29 }
  0x4c   : > { %v2706_v35 = vld [vmem:[#allocation5 + $0x80] sm:$0xf]  ;;  %v3718_v36 = vld [vmem:[#allocation5 + $0x8c] sm:$0xf0]  ;;  %v3107_v38 = vor.u32 %v3818_v32, %v3106_v31  ;;  %1759 = vmatpush.bf16.msra.mxu1 %v2851_v33  ;;  %p4234_p9 = pnand %p4233_p8, %p4229_p5 }
  0x4d   : > { %v2834_v37 = vld [vmem:[#allocation5 + $0x180] sm:$0xf]  ;;  %v3750_v39 = vld [vmem:[#allocation5 + $0x18c] sm:$0xf0]  ;;  %v2707_v44 = vor.u32 %v3718_v36, %v2706_v35  ;;  %1772 = vmatpush.bf16.msra.mxu2 %v2979_v34 }
  0x4e   : > { %v2962_v40 = vld [vmem:[#allocation5 + $0x280] sm:$0xf]  ;;  %v3782_v41 = vld [vmem:[#allocation5 + $0x28c] sm:$0xf0]  ;;  %v2835_v45 = vor.u32 %v3750_v39, %v2834_v37  ;;  %1785 = vmatpush.bf16.msra.mxu3 %v3107_v38  ;;  %v3728_v37 = vld [vmem:[#allocation5 + $0xe4] sm:$0xf] }
  0x4f   : > { %v3090_v42 = vld [vmem:[#allocation5 + $0x380] sm:$0xf]  ;;  %v3814_v43 = vld [vmem:[#allocation5 + $0x38c] sm:$0xf0]  ;;  %v2963_v46 = vor.u32 %v3782_v41, %v2962_v40  ;;  %1747 = vmatpush.bf16.msra.mxu0 %v2707_v44  ;;  %v2756_v38 = vld [vmem:[#allocation5 + $0xf0] sm:$0xf0] }
  0x50   : > { %v2690_v47 = vld [vmem:[#allocation5 + $0x60] sm:$0xf]  ;;  %v3714_v48 = vld [vmem:[#allocation5 + $0x6c] sm:$0xf0]  ;;  %v3091_v50 = vor.u32 %v3814_v43, %v3090_v42  ;;  %1760 = vmatpush.bf16.msra.mxu1 %v2835_v45 }
  0x51   : > { %v2818_v49 = vld [vmem:[#allocation5 + $0x160] sm:$0xf]  ;;  %v3746_v51 = vld [vmem:[#allocation5 + $0x16c] sm:$0xf0]  ;;  %v2691_v56 = vor.u32 %v3714_v48, %v2690_v47  ;;  %1773 = vmatpush.bf16.msra.mxu2 %v2963_v46  ;;  %v2759_v46 = vor.u32 %v3728_v37, %v2756_v38 }
  0x52   : > { %v2946_v52 = vld [vmem:[#allocation5 + $0x260] sm:$0xf]  ;;  %v3778_v53 = vld [vmem:[#allocation5 + $0x26c] sm:$0xf0]  ;;  %v2819_v57 = vor.u32 %v3746_v51, %v2818_v49  ;;  %1786 = vmatpush.bf16.msra.mxu3 %v3091_v50  ;;  %v3724_v50 = vld [vmem:[#allocation5 + $0xc4] sm:$0xf] }
  0x53   : > { %v3074_v54 = vld [vmem:[#allocation5 + $0x360] sm:$0xf]  ;;  %v3810_v55 = vld [vmem:[#allocation5 + $0x36c] sm:$0xf0]  ;;  %v2947_v58 = vor.u32 %v3778_v53, %v2946_v52  ;;  %1748 = vmatpush.bf16.msra.mxu0 %v2691_v56  ;;  %v2740_v51 = vld [vmem:[#allocation5 + $0xd0] sm:$0xf0] }
  0x54   : > { %v2674_v59 = vld [vmem:[#allocation5 + $0x40] sm:$0xf]  ;;  %v3710_v60 = vld [vmem:[#allocation5 + $0x4c] sm:$0xf0]  ;;  %v3075_v62 = vor.u32 %v3810_v55, %v3074_v54  ;;  %1761 = vmatpush.bf16.msra.mxu1 %v2819_v57 }
  0x55   : > { %v2802_v61 = vld [vmem:[#allocation5 + $0x140] sm:$0xf]  ;;  %v3742_v63 = vld [vmem:[#allocation5 + $0x14c] sm:$0xf0]  ;;  %v2675_v4 = vor.u32 %v3710_v60, %v2674_v59  ;;  %1774 = vmatpush.bf16.msra.mxu2 %v2947_v58  ;;  %v2743_v59 = vor.u32 %v3724_v50, %v2740_v51 }
  0x56   : > { %v2930_v0 = vld [vmem:[#allocation5 + $0x240] sm:$0xf]  ;;  %v3774_v1 = vld [vmem:[#allocation5 + $0x24c] sm:$0xf0]  ;;  %v2803_v5 = vor.u32 %v3742_v63, %v2802_v61  ;;  %1787 = vmatpush.bf16.msra.mxu3 %v3075_v62  ;;  %v3720_v62 = vld [vmem:[#allocation5 + $0xa4] sm:$0xf] }
  0x57   : > { %v3058_v2 = vld [vmem:[#allocation5 + $0x340] sm:$0xf]  ;;  %v3806_v3 = vld [vmem:[#allocation5 + $0x34c] sm:$0xf0]  ;;  %v2931_v6 = vor.u32 %v3774_v1, %v2930_v0  ;;  %1749 = vmatpush.bf16.msra.mxu0 %v2675_v4  ;;  %v2724_v63 = vld [vmem:[#allocation5 + $0xb0] sm:$0xf0] }
  0x58   : > { %v2658_v7 = vld [vmem:[#allocation5 + $0x20] sm:$0xf]  ;;  %v3706_v8 = vld [vmem:[#allocation5 + $0x2c] sm:$0xf0]  ;;  %v3059_v10 = vor.u32 %v3806_v3, %v3058_v2  ;;  %1762 = vmatpush.bf16.msra.mxu1 %v2803_v5  ;;  %v361_v3 = vld [vmem:[%s4450_s28] sm:$0xff] }
  0x59   : > { %v2786_v9 = vld [vmem:[#allocation5 + $0x120] sm:$0xf]  ;;  %v3738_v11 = vld [vmem:[#allocation5 + $0x12c] sm:$0xf0]  ;;  %v2659_v16 = vor.u32 %v3706_v8, %v2658_v7  ;;  %1775 = vmatpush.bf16.msra.mxu2 %v2931_v6 }
  0x5a   : > { %v2914_v12 = vld [vmem:[#allocation5 + $0x220] sm:$0xf]  ;;  %v3770_v13 = vld [vmem:[#allocation5 + $0x22c] sm:$0xf0]  ;;  %v2787_v19 = vor.u32 %v3738_v11, %v2786_v9  ;;  %1788 = vmatpush.bf16.msra.mxu3 %v3059_v10  ;;  %v603_v9 = vunpack.c.l.b16 %v361_v3  ;;  %v2727_v11 = vor.u32 %v3720_v62, %v2724_v63 }
  0x5b   : > { %v3042_v14 = vld [vmem:[#allocation5 + $0x320] sm:$0xf]  ;;  %v3802_v15 = vld [vmem:[#allocation5 + $0x32c] sm:$0xf0]  ;;  %v2915_v20 = vor.u32 %v3770_v13, %v2914_v12  ;;  %1750 = vmatpush.bf16.msra.mxu0 %v2659_v16  ;;  %v3716_v16 = vld [vmem:[#allocation5 + $0x84] sm:$0xf] }
  0x5c   : > { %v2642_v17 = vld [vmem:[#allocation5] sm:$0xf]  ;;  %v3702_v18 = vld [vmem:[#allocation5 + $0xc] sm:$0xf0]  ;;  %v3043_v24 = vor.u32 %v3802_v15, %v3042_v14  ;;  %1763 = vmatpush.bf16.msra.mxu1 %v2787_v19  ;;  %v604_v15 = vunpack.c.h.b16 %v361_v3  ;;  %v4468_v19 = vpack.c.b16 %v603_v9, %v603_v9  ;;  %v2884_v9 = vld [vmem:[#allocation5 + $0x1f0] sm:$0xf0] }
  0x5d   : > { %v2770_v21 = vld [vmem:[#allocation5 + $0x100] sm:$0xf]  ;;  %v3734_v22 = vld [vmem:[#allocation5 + $0x10c] sm:$0xf0]  ;;  %v2643_v31 = vor.u32 %v3702_v18, %v2642_v17  ;;  %1776 = vmatpush.bf16.msra.mxu2 %v2915_v20  ;;  %v2708_v17 = vld [vmem:[#allocation5 + $0x90] sm:$0xf0] }
  0x5e   : > { %v2898_v23 = vld [vmem:[#allocation5 + $0x200] sm:$0xf]  ;;  %v3766_v25 = vld [vmem:[#allocation5 + $0x20c] sm:$0xf0]  ;;  %v2771_v35 = vor.u32 %v3734_v22, %v2770_v21  ;;  %1789 = vmatpush.bf16.msra.mxu3 %v3043_v24  ;;  %v4472_v22 = vpack.c.b16 %v604_v15, %v604_v15 }
  0x5f   : > { %v3026_v26 = vld [vmem:[#allocation5 + $0x300] sm:$0xf]  ;;  %v3798_v27 = vld [vmem:[#allocation5 + $0x30c] sm:$0xf0]  ;;  %v2899_v36 = vor.u32 %v3766_v25, %v2898_v23  ;;  %1751 = vmatpush.bf16.msra.mxu0 %v2643_v31 }
  0x60   : > { %v3266_v28 = vld [vmem:[#allocation5 + $0x4e0] sm:$0xf]  ;;  %v3858_v29 = vld [vmem:[#allocation5 + $0x4ec] sm:$0xf0]  ;;  %v3027_v39 = vor.u32 %v3798_v27, %v3026_v26  ;;  %1764 = vmatpush.bf16.msra.mxu1 %v2771_v35 }
  0x61   : > { %v3394_v30 = vld [vmem:[#allocation5 + $0x5e0] sm:$0xf]  ;;  %v3890_v32 = vld [vmem:[#allocation5 + $0x5ec] sm:$0xf0]  ;;  %v3267_v40 = vor.u32 %v3858_v29, %v3266_v28  ;;  %1777 = vmatpush.bf16.msra.mxu2 %v2899_v36  ;;  %v2711_v28 = vor.u32 %v3716_v16, %v2708_v17 }
  0x62   : > { %v3522_v33 = vld [vmem:[#allocation5 + $0x6e0] sm:$0xf]  ;;  %v3922_v34 = vld [vmem:[#allocation5 + $0x6ec] sm:$0xf0]  ;;  %v3395_v41 = vor.u32 %v3890_v32, %v3394_v30  ;;  %1790 = vmatpush.bf16.msra.mxu3 %v3027_v39  ;;  %v3712_v32 = vld [vmem:[#allocation5 + $0x64] sm:$0xf]  ;;  %1752 = vmatmul.bf16.vlgmr.msra.gmra.mxu0 %v4468_v19 }
  0x63   : > { %v3523_v42 = vor.u32 %v3922_v34, %v3522_v33  ;;  %v3250_v43 = vld [vmem:[#allocation5 + $0x4c0] sm:$0xf]  ;;  %v3854_v44 = vld [vmem:[#allocation5 + $0x4cc] sm:$0xf0]  ;;  %1796 = vmatpush.bf16.msrb.mxu0 %v3267_v40  ;;  %v2692_v33 = vld [vmem:[#allocation5 + $0x70] sm:$0xf0]  ;;  %1765 = vmatmul.bf16.vlgmr.msra.gmra.mxu1 %v4472_v22 }
  0x64   : > { %v3378_v45 = vld [vmem:[#allocation5 + $0x5c0] sm:$0xf]  ;;  %v3886_v47 = vld [vmem:[#allocation5 + $0x5cc] sm:$0xf0]  ;;  %v3251_v52 = vor.u32 %v3854_v44, %v3250_v43  ;;  %1809 = vmatpush.bf16.msrb.mxu1 %v3395_v41  ;;  %v2695_v40 = vor.u32 %v3712_v32, %v2692_v33  ;;  %v3708_v44 = vld [vmem:[#allocation5 + $0x44] sm:$0xf] }
  0x65   : > { %v3506_v48 = vld [vmem:[#allocation5 + $0x6c0] sm:$0xf]  ;;  %v3918_v49 = vld [vmem:[#allocation5 + $0x6cc] sm:$0xf0]  ;;  %1822 = vmatpush.bf16.msrb.mxu2 %v3523_v42  ;;  %v3379_v54 = vor.u32 %v3886_v47, %v3378_v45  ;;  %v2676_v45 = vld [vmem:[#allocation5 + $0x50] sm:$0xf0] }
  0x66   : > { %v3234_v53 = vld [vmem:[#allocation5 + $0x4a0] sm:$0xf]  ;;  %v3507_v55 = vor.u32 %v3918_v49, %v3506_v48  ;;  %v3850_v56 = vld [vmem:[#allocation5 + $0x4ac] sm:$0xf0]  ;;  %1835 = vmatpush.bf16.msrb.mxu3 %v2759_v46  ;;  %v3788_v32 = vld [vmem:[#allocation5 + $0x2c4] sm:$0xf] }
  0x67   : > { %v3362_v57 = vld [vmem:[#allocation5 + $0x5a0] sm:$0xf]  ;;  %v3882_v58 = vld [vmem:[#allocation5 + $0x5ac] sm:$0xf0]  ;;  %1797 = vmatpush.bf16.msrb.mxu0 %v3251_v52  ;;  %v3235_v0 = vor.u32 %v3850_v56, %v3234_v53  ;;  %v2679_v52 = vor.u32 %v3708_v44, %v2676_v45  ;;  %v3704_v56 = vld [vmem:[#allocation5 + $0x24] sm:$0xf] }
  0x68   : > { %v3490_v60 = vld [vmem:[#allocation5 + $0x6a0] sm:$0xf]  ;;  %v3914_v61 = vld [vmem:[#allocation5 + $0x6ac] sm:$0xf0]  ;;  %v3363_v1 = vor.u32 %v3882_v58, %v3362_v57  ;;  %1810 = vmatpush.bf16.msrb.mxu1 %v3379_v54  ;;  %v2660_v57 = vld [vmem:[#allocation5 + $0x30] sm:$0xf0] }
  0x69   : > { %v362_v2 = vld [vmem:[%s4450_s28 + $0x8] sm:$0xff]  ;;  %1823 = vmatpush.bf16.msrb.mxu2 %v3507_v55  ;;  %v3491_v4 = vor.u32 %v3914_v61, %v3490_v60  ;;  %v3218_v5 = vld [vmem:[#allocation5 + $0x480] sm:$0xf]  ;;  %v3752_v45 = vld [vmem:[#allocation5 + $0x1a4] sm:$0xf] }
  0x6a   : > { %v3846_v6 = vld [vmem:[#allocation5 + $0x48c] sm:$0xf0]  ;;  %v3346_v7 = vld [vmem:[#allocation5 + $0x580] sm:$0xf]  ;;  %v605_v8 = vunpack.c.l.b16 %v362_v2  ;;  %v606_v10 = vunpack.c.h.b16 %v362_v2  ;;  %1836 = vmatpush.bf16.msrb.mxu3 %v2743_v59 }
  0x6b   : > { %v3878_v12 = vld [vmem:[#allocation5 + $0x58c] sm:$0xf0]  ;;  %v3474_v13 = vld [vmem:[#allocation5 + $0x680] sm:$0xf]  ;;  %1798 = vmatpush.bf16.msrb.mxu0 %v3235_v0  ;;  %v3219_v21 = vor.u32 %v3846_v6, %v3218_v5  ;;  %v3700_v5 = vld [vmem:[#allocation5 + $0x4] sm:$0xf] }
  0x6c   : > { %v3910_v14 = vld [vmem:[#allocation5 + $0x68c] sm:$0xf0]  ;;  %v4466_v18 = vpack.c.b16 %v605_v8, %v605_v8  ;;  %v4470_v20 = vpack.c.b16 %v606_v10, %v606_v10  ;;  %1811 = vmatpush.bf16.msrb.mxu1 %v3363_v1  ;;  %v3347_v23 = vor.u32 %v3878_v12, %v3346_v7  ;;  %v3202_v25 = vld [vmem:[#allocation5 + $0x460] sm:$0xf]  ;;  %v2644_v6 = vld [vmem:[#allocation5 + $0x10] sm:$0xf0] }
  0x6d   : > { %1824 = vmatpush.bf16.msrb.mxu2 %v3491_v4  ;;  %v3475_v24 = vor.u32 %v3910_v14, %v3474_v13  ;;  %v3842_v26 = vld [vmem:[#allocation5 + $0x46c] sm:$0xf0]  ;;  %v3330_v27 = vld [vmem:[#allocation5 + $0x560] sm:$0xf]  ;;  %v2663_v4 = vor.u32 %v3704_v56, %v2660_v57  ;;  %v363_v7 = vld [vmem:[%s4450_s28 + $0x10] sm:$0xff] }
  0x6e   : > { %1837 = vmatpush.bf16.msrb.mxu3 %v2727_v11  ;;  %v3874_v29 = vld [vmem:[#allocation5 + $0x56c] sm:$0xf0]  ;;  %v3458_v30 = vld [vmem:[#allocation5 + $0x660] sm:$0xf]  ;;  %1778 = vmatmul.bf16.vlgmr.msra.gmra.mxu2 %v4466_v18  ;;  %v3203_v34 = vor.u32 %v3842_v26, %v3202_v25  ;;  %v3760_v8 = vld [vmem:[#allocation5 + $0x1e4] sm:$0xf]  ;;  %v608_v25 = vunpack.c.h.b16 %v363_v7  ;;  %v2647_v26 = vor.u32 %v3700_v5, %v2644_v6 }
  0x6f   : > { %v3906_v31 = vld [vmem:[#allocation5 + $0x66c] sm:$0xf0]  ;;  %1791 = vmatmul.bf16.vlgmr.msra.gmra.mxu3 %v4470_v20  ;;  %1799 = vmatpush.bf16.msrb.mxu0 %v3219_v21  ;;  %v3331_v35 = vor.u32 %v3874_v29, %v3330_v27  ;;  %v3186_v37 = vld [vmem:[#allocation5 + $0x440] sm:$0xf]  ;;  %v3792_v10 = vld [vmem:[#allocation5 + $0x2e4] sm:$0xf]  ;;  %v2887_v27 = vor.u32 %v3760_v8, %v2884_v9 }
  0x70   : > { %1812 = vmatpush.bf16.msrb.mxu1 %v3347_v23  ;;  %v3459_v36 = vor.u32 %v3906_v31, %v3458_v30  ;;  %v3838_v38 = vld [vmem:[#allocation5 + $0x44c] sm:$0xf0]  ;;  %v3314_v39 = vld [vmem:[#allocation5 + $0x540] sm:$0xf]  ;;  %v3012_v12 = vld [vmem:[#allocation5 + $0x2f0] sm:$0xf0] }
  0x71   : > { %1825 = vmatpush.bf16.msrb.mxu2 %v3475_v24  ;;  %v3870_v41 = vld [vmem:[#allocation5 + $0x54c] sm:$0xf0]  ;;  %v3442_v42 = vld [vmem:[#allocation5 + $0x640] sm:$0xf]  ;;  %v3187_v46 = vor.u32 %v3838_v38, %v3186_v37  ;;  %v3824_v13 = vld [vmem:[#allocation5 + $0x3e4] sm:$0xf]  ;;  %v607_v24 = vunpack.c.l.b16 %v363_v7 }
  0x72   : > { %1838 = vmatpush.bf16.msrb.mxu3 %v2711_v28  ;;  %v3902_v43 = vld [vmem:[#allocation5 + $0x64c] sm:$0xf0]  ;;  %v3315_v47 = vor.u32 %v3870_v41, %v3314_v39  ;;  %v3170_v49 = vld [vmem:[#allocation5 + $0x420] sm:$0xf]  ;;  %v3140_v14 = vld [vmem:[#allocation5 + $0x3f0] sm:$0xf0]  ;;  %v3015_v28 = vor.u32 %v3792_v10, %v3012_v12  ;;  %v4484_v41 = vpack.c.b16 %v608_v25, %v608_v25 }
  0x73   : > { %1800 = vmatpush.bf16.msrb.mxu0 %v3203_v34  ;;  %v3443_v48 = vor.u32 %v3902_v43, %v3442_v42  ;;  %v3834_v50 = vld [vmem:[#allocation5 + $0x42c] sm:$0xf0]  ;;  %v3298_v51 = vld [vmem:[#allocation5 + $0x520] sm:$0xf]  ;;  %v3856_v21 = vld [vmem:[#allocation5 + $0x4e4] sm:$0xf]  ;;  %v3143_v29 = vor.u32 %v3824_v13, %v3140_v14 }
  0x74   : > { %1813 = vmatpush.bf16.msrb.mxu1 %v3331_v35  ;;  %v3866_v53 = vld [vmem:[#allocation5 + $0x52c] sm:$0xf0]  ;;  %v3426_v54 = vld [vmem:[#allocation5 + $0x620] sm:$0xf]  ;;  %v3171_v59 = vor.u32 %v3834_v50, %v3170_v49  ;;  %v3268_v23 = vld [vmem:[#allocation5 + $0x4f0] sm:$0xf0] }
  0x75   : > { %1826 = vmatpush.bf16.msrb.mxu2 %v3459_v36  ;;  %v3898_v55 = vld [vmem:[#allocation5 + $0x62c] sm:$0xf0]  ;;  %v3154_v58 = vld [vmem:[#allocation5 + $0x400] sm:$0xf]  ;;  %v3299_v63 = vor.u32 %v3866_v53, %v3298_v51  ;;  %v3756_v30 = vld [vmem:[#allocation5 + $0x1c4] sm:$0xf]  ;;  %v3271_v33 = vor.u32 %v3856_v21, %v3268_v23 }
  0x76   : > { %1839 = vmatpush.bf16.msrb.mxu3 %v2695_v40  ;;  %v3830_v60 = vld [vmem:[#allocation5 + $0x40c] sm:$0xf0]  ;;  %v3282_v61 = vld [vmem:[#allocation5 + $0x500] sm:$0xf]  ;;  %v3427_v0 = vor.u32 %v3898_v55, %v3426_v54  ;;  %v2868_v31 = vld [vmem:[#allocation5 + $0x1d0] sm:$0xf0]  ;;  %v4482_v40 = vpack.c.b16 %v607_v24, %v607_v24 }
  0x77   : > { %1801 = vmatpush.bf16.msrb.mxu0 %v3187_v46  ;;  %v3862_v62 = vld [vmem:[#allocation5 + $0x50c] sm:$0xf0]  ;;  %v3410_v1 = vld [vmem:[#allocation5 + $0x600] sm:$0xf]  ;;  %v3155_v11 = vor.u32 %v3830_v60, %v3154_v58  ;;  %v2996_v34 = vld [vmem:[#allocation5 + $0x2d0] sm:$0xf0]  ;;  %v2871_v42 = vor.u32 %v3756_v30, %v2868_v31 }
  0x78   : > { %1814 = vmatpush.bf16.msrb.mxu1 %v3315_v47  ;;  %v3894_v2 = vld [vmem:[#allocation5 + $0x60c] sm:$0xf0]  ;;  %v364_v3 = vld [vmem:[%s4450_s28 + $0x18] sm:$0xf]  ;;  %v3283_v16 = vor.u32 %v3862_v62, %v3282_v61  ;;  %v3820_v35 = vld [vmem:[#allocation5 + $0x3c4] sm:$0xf]  ;;  %v2999_v43 = vor.u32 %v3788_v32, %v2996_v34 }
  0x79   : > { %1827 = vmatpush.bf16.msrb.mxu2 %v3443_v48  ;;  %v609_v15 = vunpack.c.l.b16 %v364_v3  ;;  %v3411_v17 = vor.u32 %v3894_v2, %v3410_v1  ;;  %v3124_v36 = vld [vmem:[#allocation5 + $0x3d0] sm:$0xf0]  ;;  %v3852_v38 = vld [vmem:[#allocation5 + $0x4c4] sm:$0xf] }
  0x7a   : > { %1840 = vmatpush.bf16.msrb.mxu3 %v2679_v52  ;;  %v3252_v39 = vld [vmem:[#allocation5 + $0x4d0] sm:$0xf0]  ;;  %v3127_v44 = vor.u32 %v3820_v35, %v3124_v36  ;;  %v3784_v47 = vld [vmem:[#allocation5 + $0x2a4] sm:$0xf] }
  0x7b   : > { %1802 = vmatpush.bf16.msrb.mxu0 %v3171_v59  ;;  %v4480_v37 = vpack.c.b16 %v609_v15, %v609_v15  ;;  %v2852_v46 = vld [vmem:[#allocation5 + $0x1b0] sm:$0xf0]  ;;  %v3255_v48 = vor.u32 %v3852_v38, %v3252_v39  ;;  %v3816_v50 = vld [vmem:[#allocation5 + $0x3a4] sm:$0xf] }
  0x7c   : > { %1815 = vmatpush.bf16.msrb.mxu1 %v3299_v63  ;;  %v2980_v49 = vld [vmem:[#allocation5 + $0x2b0] sm:$0xf0]  ;;  %v3848_v52 = vld [vmem:[#allocation5 + $0x4a4] sm:$0xf]  ;;  %v2855_v54 = vor.u32 %v3752_v45, %v2852_v46 }
  0x7d   : > { %1828 = vmatpush.bf16.msrb.mxu2 %v3427_v0  ;;  %v3108_v51 = vld [vmem:[#allocation5 + $0x3b0] sm:$0xf0]  ;;  %v2983_v55 = vor.u32 %v3784_v47, %v2980_v49  ;;  %v3748_v57 = vld [vmem:[#allocation5 + $0x184] sm:$0xf] }
  0x7e   : > { %1841 = vmatpush.bf16.msrb.mxu3 %v2663_v4  ;;  %v3236_v53 = vld [vmem:[#allocation5 + $0x4b0] sm:$0xf0]  ;;  %v3111_v56 = vor.u32 %v3816_v50, %v3108_v51  ;;  %v3780_v59 = vld [vmem:[#allocation5 + $0x284] sm:$0xf] }
  0x7f   : > { %1803 = vmatpush.bf16.msrb.mxu0 %v3155_v11  ;;  %v2836_v58 = vld [vmem:[#allocation5 + $0x190] sm:$0xf0]  ;;  %v3239_v60 = vor.u32 %v3848_v52, %v3236_v53  ;;  %v3812_v62 = vld [vmem:[#allocation5 + $0x384] sm:$0xf] }
  0x80   : > { %1816 = vmatpush.bf16.msrb.mxu1 %v3283_v16  ;;  %v2964_v61 = vld [vmem:[#allocation5 + $0x290] sm:$0xf0]  ;;  %v3844_v0 = vld [vmem:[#allocation5 + $0x484] sm:$0xf]  ;;  %v2839_v2 = vor.u32 %v3748_v57, %v2836_v58 }
  0x81   : > { %1829 = vmatpush.bf16.msrb.mxu2 %v3411_v17  ;;  %v3092_v63 = vld [vmem:[#allocation5 + $0x390] sm:$0xf0]  ;;  %v2967_v3 = vor.u32 %v3780_v59, %v2964_v61  ;;  %v3744_v5 = vld [vmem:[#allocation5 + $0x164] sm:$0xf] }
  0x82   : > { %1842 = vmatpush.bf16.msrb.mxu3 %v2647_v26  ;;  %1804 = vmatmul.bf16.vlgmr.msrb.gmra.mxu0 %v4482_v40  ;;  %v3220_v1 = vld [vmem:[#allocation5 + $0x490] sm:$0xf0]  ;;  %v3095_v4 = vor.u32 %v3812_v62, %v3092_v63  ;;  %v3776_v7 = vld [vmem:[#allocation5 + $0x264] sm:$0xf]  ;;  %v2762_v62 = vld [vmem:[#allocation5 + $0xe8] sm:$0xf] }
  0x83   : > { %1848 = vmatpush.bf16.msra.mxu0 %v2887_v27  ;;  %1817 = vmatmul.bf16.vlgmr.msrb.gmra.mxu1 %v4484_v41  ;;  %v2820_v6 = vld [vmem:[#allocation5 + $0x170] sm:$0xf0]  ;;  %v3223_v8 = vor.u32 %v3844_v0, %v3220_v1  ;;  %v3808_v10 = vld [vmem:[#allocation5 + $0x364] sm:$0xf]  ;;  %v3731_v63 = vld [vmem:[#allocation5 + $0xf4] sm:$0xf0] }
  0x84   : > { %1861 = vmatpush.bf16.msra.mxu1 %v3015_v28  ;;  %1830 = vmatmul.bf16.vlgmr.msrb.gmra.mxu2 %v4480_v37  ;;  %v2948_v9 = vld [vmem:[#allocation5 + $0x270] sm:$0xf0]  ;;  %v3840_v12 = vld [vmem:[#allocation5 + $0x464] sm:$0xf]  ;;  %v2823_v14 = vor.u32 %v3744_v5, %v2820_v6 }
  0x85   : > { %1874 = vmatpush.bf16.msra.mxu2 %v3143_v29  ;;  %1843 = vmatmul.bf16.vlgmr.msrb.gmra.mxu3 %v4468_v19  ;;  %v3076_v11 = vld [vmem:[#allocation5 + $0x370] sm:$0xf0]  ;;  %v2951_v15 = vor.u32 %v3776_v7, %v2948_v9  ;;  %v3740_v17 = vld [vmem:[#allocation5 + $0x144] sm:$0xf]  ;;  %v2763_v7 = vor.u32 %v3731_v63, %v2762_v62 }
  0x86   : > { %1887 = vmatpush.bf16.msra.mxu3 %v3271_v33  ;;  %v3204_v13 = vld [vmem:[#allocation5 + $0x470] sm:$0xf0]  ;;  %v3079_v16 = vor.u32 %v3808_v10, %v3076_v11  ;;  %v3772_v23 = vld [vmem:[#allocation5 + $0x244] sm:$0xf] }
  0x87   : > { %1849 = vmatpush.bf16.msra.mxu0 %v2871_v42  ;;  %v2804_v21 = vld [vmem:[#allocation5 + $0x150] sm:$0xf0]  ;;  %v3207_v24 = vor.u32 %v3840_v12, %v3204_v13  ;;  %v3804_v26 = vld [vmem:[#allocation5 + $0x344] sm:$0xf]  ;;  %v2746_v13 = vld [vmem:[#allocation5 + $0xc8] sm:$0xf] }
  0x88   : > { %1862 = vmatpush.bf16.msra.mxu1 %v2999_v43  ;;  %v2932_v25 = vld [vmem:[#allocation5 + $0x250] sm:$0xf0]  ;;  %v3836_v28 = vld [vmem:[#allocation5 + $0x444] sm:$0xf]  ;;  %v2807_v30 = vor.u32 %v3740_v17, %v2804_v21 }
  0x89   : > { %1875 = vmatpush.bf16.msra.mxu2 %v3127_v44  ;;  %v3060_v27 = vld [vmem:[#allocation5 + $0x350] sm:$0xf0]  ;;  %v2935_v31 = vor.u32 %v3772_v23, %v2932_v25  ;;  %v3736_v33 = vld [vmem:[#allocation5 + $0x124] sm:$0xf] }
  0x8a   : > { %1888 = vmatpush.bf16.msra.mxu3 %v3255_v48  ;;  %v3188_v29 = vld [vmem:[#allocation5 + $0x450] sm:$0xf0]  ;;  %v3063_v32 = vor.u32 %v3804_v26, %v3060_v27  ;;  %v3768_v35 = vld [vmem:[#allocation5 + $0x224] sm:$0xf] }
  0x8b   : > { %1850 = vmatpush.bf16.msra.mxu0 %v2855_v54  ;;  %v2788_v34 = vld [vmem:[#allocation5 + $0x130] sm:$0xf0]  ;;  %v3191_v36 = vor.u32 %v3836_v28, %v3188_v29  ;;  %v3800_v39 = vld [vmem:[#allocation5 + $0x324] sm:$0xf]  ;;  %v2730_v29 = vld [vmem:[#allocation5 + $0xa8] sm:$0xf] }
  0x8c   : > { %1863 = vmatpush.bf16.msra.mxu1 %v2983_v55  ;;  %v2916_v38 = vld [vmem:[#allocation5 + $0x230] sm:$0xf0]  ;;  %v3832_v43 = vld [vmem:[#allocation5 + $0x424] sm:$0xf]  ;;  %v2791_v45 = vor.u32 %v3736_v33, %v2788_v34 }
  0x8d   : > { %1876 = vmatpush.bf16.msra.mxu2 %v3111_v56  ;;  %v3044_v42 = vld [vmem:[#allocation5 + $0x330] sm:$0xf0]  ;;  %v3732_v46 = vld [vmem:[#allocation5 + $0x104] sm:$0xf]  ;;  %v2919_v48 = vor.u32 %v3768_v35, %v2916_v38 }
  0x8e   : > { %1889 = vmatpush.bf16.msra.mxu3 %v3239_v60  ;;  %v3172_v44 = vld [vmem:[#allocation5 + $0x430] sm:$0xf0]  ;;  %v3047_v49 = vor.u32 %v3800_v39, %v3044_v42  ;;  %v3764_v50 = vld [vmem:[#allocation5 + $0x204] sm:$0xf] }
  0x8f   : > { %1851 = vmatpush.bf16.msra.mxu0 %v2839_v2  ;;  %v2772_v47 = vld [vmem:[#allocation5 + $0x110] sm:$0xf0]  ;;  %v3796_v52 = vld [vmem:[#allocation5 + $0x304] sm:$0xf]  ;;  %v3175_v53 = vor.u32 %v3832_v43, %v3172_v44  ;;  %v2890_v2 = vld [vmem:[#allocation5 + $0x1e8] sm:$0xf] }
  0x90   : > { %1864 = vmatpush.bf16.msra.mxu1 %v2967_v3  ;;  %v2900_v51 = vld [vmem:[#allocation5 + $0x210] sm:$0xf0]  ;;  %v3828_v55 = vld [vmem:[#allocation5 + $0x404] sm:$0xf]  ;;  %v2775_v60 = vor.u32 %v3732_v46, %v2772_v47  ;;  %v3763_v3 = vld [vmem:[#allocation5 + $0x1f4] sm:$0xf0] }
  0x91   : > { %1877 = vmatpush.bf16.msra.mxu2 %v3095_v4  ;;  %v3028_v54 = vld [vmem:[#allocation5 + $0x310] sm:$0xf0]  ;;  %v3888_v57 = vld [vmem:[#allocation5 + $0x5e4] sm:$0xf]  ;;  %v2903_v0 = vor.u32 %v3764_v50, %v2900_v51  ;;  %v2891_v11 = vor.u32 %v3763_v3, %v2890_v2  ;;  %v2714_v44 = vld [vmem:[#allocation5 + $0x88] sm:$0xf] }
  0x92   : > { %1890 = vmatpush.bf16.msra.mxu3 %v3223_v8  ;;  %v3156_v56 = vld [vmem:[#allocation5 + $0x410] sm:$0xf0]  ;;  %v3920_v59 = vld [vmem:[#allocation5 + $0x6e4] sm:$0xf]  ;;  %v3031_v1 = vor.u32 %v3796_v52, %v3028_v54  ;;  %v2842_v46 = vld [vmem:[#allocation5 + $0x188] sm:$0xf] }
  0x93   : > { %1852 = vmatpush.bf16.msra.mxu0 %v2823_v14  ;;  %v3396_v58 = vld [vmem:[#allocation5 + $0x5f0] sm:$0xf0]  ;;  %v3159_v4 = vor.u32 %v3828_v55, %v3156_v56  ;;  %v3884_v8 = vld [vmem:[#allocation5 + $0x5c4] sm:$0xf]  ;;  %v3727_v14 = vld [vmem:[#allocation5 + $0xd4] sm:$0xf0] }
  0x94   : > { %1865 = vmatpush.bf16.msra.mxu1 %v2951_v15  ;;  %v3524_v61 = vld [vmem:[#allocation5 + $0x6f0] sm:$0xf0]  ;;  %v3399_v5 = vor.u32 %v3888_v57, %v3396_v58  ;;  %v3916_v10 = vld [vmem:[#allocation5 + $0x6c4] sm:$0xf]  ;;  %v2874_v15 = vld [vmem:[#allocation5 + $0x1c8] sm:$0xf]  ;;  %v2747_v23 = vor.u32 %v3727_v14, %v2746_v13 }
  0x95   : > { %1878 = vmatpush.bf16.msra.mxu2 %v3079_v16  ;;  %v3527_v6 = vor.u32 %v3920_v59, %v3524_v61  ;;  %v3380_v9 = vld [vmem:[#allocation5 + $0x5d0] sm:$0xf0]  ;;  %v3759_v16 = vld [vmem:[#allocation5 + $0x1d4] sm:$0xf0]  ;;  %v3912_v26 = vld [vmem:[#allocation5 + $0x6a4] sm:$0xf] }
  0x96   : > { %1891 = vmatpush.bf16.msra.mxu3 %v3207_v24  ;;  %v3508_v12 = vld [vmem:[#allocation5 + $0x6d0] sm:$0xf0]  ;;  %v3383_v17 = vor.u32 %v3884_v8, %v3380_v9  ;;  %v3880_v24 = vld [vmem:[#allocation5 + $0x5a4] sm:$0xf]  ;;  %v2875_v27 = vor.u32 %v3759_v16, %v2874_v15  ;;  %v3751_v47 = vld [vmem:[#allocation5 + $0x194] sm:$0xf0] }
  0x97   : > { %1853 = vmatpush.bf16.msra.mxu0 %v2807_v30  ;;  %v3511_v21 = vor.u32 %v3916_v10, %v3508_v12  ;;  %v3364_v25 = vld [vmem:[#allocation5 + $0x5b0] sm:$0xf0]  ;;  %v3723_v30 = vld [vmem:[#allocation5 + $0xb4] sm:$0xf0]  ;;  %v3908_v39 = vld [vmem:[#allocation5 + $0x684] sm:$0xf]  ;;  %v2843_v54 = vor.u32 %v3751_v47, %v2842_v46 }
  0x98   : > { %1866 = vmatpush.bf16.msra.mxu1 %v2935_v31  ;;  %v3492_v28 = vld [vmem:[#allocation5 + $0x6b0] sm:$0xf0]  ;;  %v2858_v31 = vld [vmem:[#allocation5 + $0x1a8] sm:$0xf]  ;;  %v3367_v33 = vor.u32 %v3880_v24, %v3364_v25  ;;  %v2731_v35 = vor.u32 %v3723_v30, %v2730_v29  ;;  %v3872_v51 = vld [vmem:[#allocation5 + $0x564] sm:$0xf] }
  0x99   : > { %1879 = vmatpush.bf16.msra.mxu2 %v3063_v32  ;;  %v3755_v32 = vld [vmem:[#allocation5 + $0x1b4] sm:$0xf0]  ;;  %v3495_v34 = vor.u32 %v3912_v26, %v3492_v28  ;;  %v3348_v38 = vld [vmem:[#allocation5 + $0x590] sm:$0xf0]  ;;  %v2698_v56 = vld [vmem:[#allocation5 + $0x68] sm:$0xf] }
  0x9a   : > { %1892 = vmatpush.bf16.msra.mxu3 %v3191_v36  ;;  %v3876_v36 = vld [vmem:[#allocation5 + $0x584] sm:$0xf]  ;;  %v2859_v42 = vor.u32 %v3755_v32, %v2858_v31  ;;  %v3476_v43 = vld [vmem:[#allocation5 + $0x690] sm:$0xf0]  ;;  %v3715_v57 = vld [vmem:[#allocation5 + $0x74] sm:$0xf0] }
  0x9b   : > { %1854 = vmatpush.bf16.msra.mxu0 %v2791_v45  ;;  %v3719_v45 = vld [vmem:[#allocation5 + $0x94] sm:$0xf0]  ;;  %v3332_v52 = vld [vmem:[#allocation5 + $0x570] sm:$0xf0]  ;;  %v2826_v58 = vld [vmem:[#allocation5 + $0x168] sm:$0xf]  ;;  %v2699_v62 = vor.u32 %v3715_v57, %v2698_v56 }
  0x9c   : > { %1867 = vmatpush.bf16.msra.mxu1 %v2919_v48  ;;  %v3351_v48 = vor.u32 %v3876_v36, %v3348_v38  ;;  %v2715_v50 = vor.u32 %v3719_v45, %v2714_v44  ;;  %v3460_v55 = vld [vmem:[#allocation5 + $0x670] sm:$0xf0]  ;;  %v3747_v59 = vld [vmem:[#allocation5 + $0x174] sm:$0xf0]  ;;  %v3868_v63 = vld [vmem:[#allocation5 + $0x544] sm:$0xf] }
  0x9d   : > { %1880 = vmatpush.bf16.msra.mxu2 %v3047_v49  ;;  %v3479_v49 = vor.u32 %v3908_v39, %v3476_v43  ;;  %v2827_v2 = vor.u32 %v3747_v59, %v2826_v58  ;;  %v3444_v3 = vld [vmem:[#allocation5 + $0x650] sm:$0xf0]  ;;  %v3896_v13 = vld [vmem:[#allocation5 + $0x624] sm:$0xf]  ;;  %v2666_v16 = vld [vmem:[#allocation5 + $0x28] sm:$0xf] }
  0x9e   : > { %1893 = vmatpush.bf16.msra.mxu3 %v3175_v53  ;;  %v3904_v53 = vld [vmem:[#allocation5 + $0x664] sm:$0xf]  ;;  %v3300_v12 = vld [vmem:[#allocation5 + $0x530] sm:$0xf0]  ;;  %v2650_v31 = vld [vmem:[#allocation5 + $0x8] sm:$0xf] }
  0x9f   : > { %1855 = vmatpush.bf16.msra.mxu0 %v2775_v60  ;;  %v3335_v60 = vor.u32 %v3872_v51, %v3332_v52  ;;  %v3463_v61 = vor.u32 %v3904_v53, %v3460_v55  ;;  %v3428_v15 = vld [vmem:[#allocation5 + $0x630] sm:$0xf0]  ;;  %v3860_v25 = vld [vmem:[#allocation5 + $0x504] sm:$0xf]  ;;  %v3018_v36 = vld [vmem:[#allocation5 + $0x2e8] sm:$0xf] }
  0xa0   : > { %1868 = vmatpush.bf16.msra.mxu1 %v2903_v0  ;;  %v3316_v0 = vld [vmem:[#allocation5 + $0x550] sm:$0xf0]  ;;  %v3892_v29 = vld [vmem:[#allocation5 + $0x604] sm:$0xf]  ;;  %v3795_v38 = vld [vmem:[#allocation5 + $0x2f4] sm:$0xf0] }
  0xa1   : > { %1881 = vmatpush.bf16.msra.mxu2 %v3031_v1  ;;  %v3900_v1 = vld [vmem:[#allocation5 + $0x644] sm:$0xf]  ;;  %v3319_v8 = vor.u32 %v3868_v63, %v3316_v0  ;;  %v3284_v26 = vld [vmem:[#allocation5 + $0x510] sm:$0xf0]  ;;  %v3146_v39 = vld [vmem:[#allocation5 + $0x3e8] sm:$0xf]  ;;  %v3019_v51 = vor.u32 %v3795_v38, %v3018_v36 }
  0xa2   : > { %1894 = vmatpush.bf16.msra.mxu3 %v3159_v4  ;;  %1856 = vmatmul.bf16.vlgmr.msra.gmra.mxu0 %v4472_v22  ;;  %v2682_v4 = vld [vmem:[#allocation5 + $0x48] sm:$0xf]  ;;  %v3447_v9 = vor.u32 %v3900_v1, %v3444_v3  ;;  %v3412_v30 = vld [vmem:[#allocation5 + $0x610] sm:$0xf0]  ;;  %v3827_v43 = vld [vmem:[#allocation5 + $0x3f4] sm:$0xf0] }
  0xa3   : > { %1900 = vmatpush.bf16.msrb.mxu0 %v3399_v5  ;;  %1869 = vmatmul.bf16.vlgmr.msra.gmra.mxu1 %v4466_v18  ;;  %v3711_v5 = vld [vmem:[#allocation5 + $0x54] sm:$0xf0]  ;;  %v3274_v44 = vld [vmem:[#allocation5 + $0x4e8] sm:$0xf]  ;;  %v3415_v46 = vor.u32 %v3892_v29, %v3412_v30  ;;  %v3147_v52 = vor.u32 %v3827_v43, %v3146_v39 }
  0xa4   : > { %1913 = vmatpush.bf16.msrb.mxu1 %v3527_v6  ;;  %1882 = vmatmul.bf16.vlgmr.msra.gmra.mxu2 %v4470_v20  ;;  %v2810_v6 = vld [vmem:[#allocation5 + $0x148] sm:$0xf]  ;;  %v2683_v10 = vor.u32 %v3711_v5, %v2682_v4  ;;  %v3859_v45 = vld [vmem:[#allocation5 + $0x4f4] sm:$0xf0] }
  0xa5   : > { %1926 = vmatpush.bf16.msrb.mxu2 %v2763_v7  ;;  %1895 = vmatmul.bf16.vlgmr.msra.gmra.mxu3 %v4482_v40  ;;  %v3743_v7 = vld [vmem:[#allocation5 + $0x154] sm:$0xf0]  ;;  %v3275_v53 = vor.u32 %v3859_v45, %v3274_v44  ;;  %v3130_v56 = vld [vmem:[#allocation5 + $0x3c8] sm:$0xf] }
  0xa6   : > { %1939 = vmatpush.bf16.msrb.mxu3 %v2891_v11  ;;  %v3864_v11 = vld [vmem:[#allocation5 + $0x524] sm:$0xf]  ;;  %v2811_v14 = vor.u32 %v3743_v7, %v2810_v6  ;;  %v3791_v55 = vld [vmem:[#allocation5 + $0x2d4] sm:$0xf0]  ;;  %v3258_v59 = vld [vmem:[#allocation5 + $0x4c8] sm:$0xf] }
  0xa7   : > { %1901 = vmatpush.bf16.msrb.mxu0 %v3383_v17  ;;  %v3707_v17 = vld [vmem:[#allocation5 + $0x34] sm:$0xf0]  ;;  %v3303_v24 = vor.u32 %v3864_v11, %v3300_v12  ;;  %v3114_v4 = vld [vmem:[#allocation5 + $0x3a8] sm:$0xf] }
  0xa8   : > { %1914 = vmatpush.bf16.msrb.mxu1 %v3511_v21  ;;  %v2794_v21 = vld [vmem:[#allocation5 + $0x128] sm:$0xf]  ;;  %v2667_v28 = vor.u32 %v3707_v17, %v2666_v16  ;;  %v3823_v58 = vld [vmem:[#allocation5 + $0x3d4] sm:$0xf0] }
  0xa9   : > { %1927 = vmatpush.bf16.msrb.mxu2 %v2747_v23  ;;  %v3739_v23 = vld [vmem:[#allocation5 + $0x134] sm:$0xf0]  ;;  %v3131_v0 = vor.u32 %v3823_v58, %v3130_v56  ;;  %v3242_v7 = vld [vmem:[#allocation5 + $0x4a8] sm:$0xf] }
  0xaa   : > { %1940 = vmatpush.bf16.msrb.mxu3 %v2875_v27  ;;  %v3431_v27 = vor.u32 %v3896_v13, %v3428_v15  ;;  %v2795_v32 = vor.u32 %v3739_v23, %v2794_v21  ;;  %v3787_v3 = vld [vmem:[#allocation5 + $0x2b4] sm:$0xf0]  ;;  %v3098_v16 = vld [vmem:[#allocation5 + $0x388] sm:$0xf] }
  0xab   : > { %1902 = vmatpush.bf16.msrb.mxu0 %v3367_v33  ;;  %v3703_v33 = vld [vmem:[#allocation5 + $0x14] sm:$0xf0]  ;;  %v3226_v23 = vld [vmem:[#allocation5 + $0x488] sm:$0xf] }
  0xac   : > { %1915 = vmatpush.bf16.msrb.mxu1 %v3495_v34  ;;  %v2778_v34 = vld [vmem:[#allocation5 + $0x108] sm:$0xf]  ;;  %v2651_v47 = vor.u32 %v3703_v33, %v2650_v31  ;;  %v3819_v6 = vld [vmem:[#allocation5 + $0x3b4] sm:$0xf0] }
  0xad   : > { %1928 = vmatpush.bf16.msrb.mxu2 %v2731_v35  ;;  %v3735_v35 = vld [vmem:[#allocation5 + $0x114] sm:$0xf0]  ;;  %v3115_v12 = vor.u32 %v3819_v6, %v3114_v4  ;;  %v2954_v30 = vld [vmem:[#allocation5 + $0x268] sm:$0xf] }
  0xae   : > { %1941 = vmatpush.bf16.msrb.mxu3 %v2859_v42  ;;  %v3287_v42 = vor.u32 %v3860_v25, %v3284_v26  ;;  %v3783_v15 = vld [vmem:[#allocation5 + $0x294] sm:$0xf0]  ;;  %v3354_v25 = vld [vmem:[#allocation5 + $0x588] sm:$0xf] }
  0xaf   : > { %1903 = vmatpush.bf16.msrb.mxu0 %v3351_v48  ;;  %v3402_v48 = vld [vmem:[#allocation5 + $0x5e8] sm:$0xf]  ;;  %v3815_v21 = vld [vmem:[#allocation5 + $0x394] sm:$0xf0] }
  0xb0   : > { %1916 = vmatpush.bf16.msrb.mxu1 %v3479_v49  ;;  %v3891_v49 = vld [vmem:[#allocation5 + $0x5f4] sm:$0xf0]  ;;  %v3338_v38 = vld [vmem:[#allocation5 + $0x568] sm:$0xf] }
  0xb1   : > { %1929 = vmatpush.bf16.msrb.mxu2 %v2715_v50  ;;  %v2779_v50 = vor.u32 %v3735_v35, %v2778_v34  ;;  %v3403_v57 = vor.u32 %v3891_v49, %v3402_v48  ;;  %v3879_v26 = vld [vmem:[#allocation5 + $0x594] sm:$0xf0]  ;;  %v3210_v35 = vld [vmem:[#allocation5 + $0x468] sm:$0xf] }
  0xb2   : > { %1942 = vmatpush.bf16.msrb.mxu3 %v2843_v54  ;;  %v3002_v54 = vld [vmem:[#allocation5 + $0x2c8] sm:$0xf]  ;;  %v3779_v31 = vld [vmem:[#allocation5 + $0x274] sm:$0xf0]  ;;  %v3355_v33 = vor.u32 %v3879_v26, %v3354_v25 }
  0xb3   : > { %1904 = vmatpush.bf16.msrb.mxu0 %v3335_v60  ;;  %v3855_v60 = vld [vmem:[#allocation5 + $0x4d4] sm:$0xf0]  ;;  %v3003_v63 = vor.u32 %v3791_v55, %v3002_v54  ;;  %v2938_v45 = vld [vmem:[#allocation5 + $0x248] sm:$0xf] }
  0xb4   : > { %1917 = vmatpush.bf16.msrb.mxu1 %v3463_v61  ;;  %v3386_v61 = vld [vmem:[#allocation5 + $0x5c8] sm:$0xf]  ;;  %v3259_v1 = vor.u32 %v3855_v60, %v3258_v59  ;;  %v3811_v34 = vld [vmem:[#allocation5 + $0x374] sm:$0xf0] }
  0xb5   : > { %1930 = vmatpush.bf16.msrb.mxu2 %v2699_v62  ;;  %v3887_v62 = vld [vmem:[#allocation5 + $0x5d4] sm:$0xf0]  ;;  %v3050_v59 = vld [vmem:[#allocation5 + $0x328] sm:$0xf] }
  0xb6   : > { %1943 = vmatpush.bf16.msrb.mxu3 %v2827_v2  ;;  %v2986_v2 = vld [vmem:[#allocation5 + $0x2a8] sm:$0xf]  ;;  %v3387_v5 = vor.u32 %v3887_v62, %v3386_v61  ;;  %v3843_v36 = vld [vmem:[#allocation5 + $0x474] sm:$0xf0] }
  0xb7   : > { %1905 = vmatpush.bf16.msrb.mxu0 %v3319_v8  ;;  %v3851_v8 = vld [vmem:[#allocation5 + $0x4b4] sm:$0xf0]  ;;  %v2987_v11 = vor.u32 %v3787_v3, %v2986_v2  ;;  %v3211_v44 = vor.u32 %v3843_v36, %v3210_v35  ;;  %v3178_v62 = vld [vmem:[#allocation5 + $0x428] sm:$0xf]  ;;  %v3725_v35 = vld [vmem:[#allocation5 + $0xcc] sm:$0xf] }
  0xb8   : > { %1918 = vmatpush.bf16.msrb.mxu1 %v3447_v9  ;;  %v3370_v9 = vld [vmem:[#allocation5 + $0x5a8] sm:$0xf]  ;;  %v3243_v13 = vor.u32 %v3851_v8, %v3242_v7  ;;  %v3875_v39 = vld [vmem:[#allocation5 + $0x574] sm:$0xf0] }
  0xb9   : > { %1931 = vmatpush.bf16.msrb.mxu2 %v2683_v10  ;;  %v3883_v10 = vld [vmem:[#allocation5 + $0x5b4] sm:$0xf0]  ;;  %v3339_v48 = vor.u32 %v3875_v39, %v3338_v38  ;;  %v2906_v3 = vld [vmem:[#allocation5 + $0x208] sm:$0xf]  ;;  %v2748_v38 = vld [vmem:[#allocation5 + $0xd8] sm:$0xf0] }
  0xba   : > { %1944 = vmatpush.bf16.msrb.mxu3 %v2811_v14  ;;  %v2970_v14 = vld [vmem:[#allocation5 + $0x288] sm:$0xf]  ;;  %v3371_v17 = vor.u32 %v3883_v10, %v3370_v9  ;;  %v3807_v49 = vld [vmem:[#allocation5 + $0x354] sm:$0xf0]  ;;  %v3757_v39 = vld [vmem:[#allocation5 + $0x1cc] sm:$0xf] }
  0xbb   : > { %1906 = vmatpush.bf16.msrb.mxu0 %v3303_v24  ;;  %v3847_v24 = vld [vmem:[#allocation5 + $0x494] sm:$0xf0]  ;;  %v3034_v7 = vld [vmem:[#allocation5 + $0x308] sm:$0xf] }
  0xbc   : > { %1919 = vmatpush.bf16.msrb.mxu1 %v3431_v27  ;;  %v2971_v27 = vor.u32 %v3783_v15, %v2970_v14  ;;  %v3227_v29 = vor.u32 %v3847_v24, %v3226_v23  ;;  %v3771_v58 = vld [vmem:[#allocation5 + $0x234] sm:$0xf0]  ;;  %v3162_v9 = vld [vmem:[#allocation5 + $0x408] sm:$0xf]  ;;  %v3761_v23 = vld [vmem:[#allocation5 + $0x1ec] sm:$0xf] }
  0xbd   : > { %1932 = vmatpush.bf16.msrb.mxu2 %v2667_v28  ;;  %v3099_v28 = vor.u32 %v3815_v21, %v3098_v16  ;;  %v3803_v61 = vld [vmem:[#allocation5 + $0x334] sm:$0xf0]  ;;  %v3530_v14 = vld [vmem:[#allocation5 + $0x6e8] sm:$0xf]  ;;  %v3729_v16 = vld [vmem:[#allocation5 + $0xec] sm:$0xf] }
  0xbe   : > { %1945 = vmatpush.bf16.msrb.mxu3 %v2795_v32  ;;  %v3082_v32 = vld [vmem:[#allocation5 + $0x368] sm:$0xf]  ;;  %v3767_v4 = vld [vmem:[#allocation5 + $0x214] sm:$0xf0]  ;;  %v2764_v21 = vld [vmem:[#allocation5 + $0xf8] sm:$0xf0] }
  0xbf   : > { %1907 = vmatpush.bf16.msrb.mxu0 %v3287_v42  ;;  %v2955_v42 = vor.u32 %v3779_v31, %v2954_v30  ;;  %v3083_v43 = vor.u32 %v3811_v34, %v3082_v32  ;;  %v3799_v8 = vld [vmem:[#allocation5 + $0x314] sm:$0xf0]  ;;  %v2892_v24 = vld [vmem:[#allocation5 + $0x1f8] sm:$0xf0]  ;;  %v2767_v31 = vor.u32 %v3729_v16, %v2764_v21 }
  0xc0   : > { %1920 = vmatpush.bf16.msrb.mxu1 %v3415_v46  ;;  %v3775_v46 = vld [vmem:[#allocation5 + $0x254] sm:$0xf0]  ;;  %v3035_v25 = vor.u32 %v3799_v8, %v3034_v7  ;;  %v2895_v32 = vor.u32 %v3761_v23, %v2892_v24  ;;  %v3466_v8 = vld [vmem:[#allocation5 + $0x668] sm:$0xf]  ;;  %v2956_v16 = vld [vmem:[#allocation5 + $0x278] sm:$0xf0] }
  0xc1   : > { %1933 = vmatpush.bf16.msrb.mxu2 %v2651_v47  ;;  %v3066_v47 = vld [vmem:[#allocation5 + $0x348] sm:$0xf]  ;;  %v2939_v54 = vor.u32 %v3775_v46, %v2938_v45  ;;  %v3923_v15 = vld [vmem:[#allocation5 + $0x6f4] sm:$0xf0]  ;;  %v2751_v46 = vor.u32 %v3725_v35, %v2748_v38 }
  0xc2   : > { %1946 = vmatpush.bf16.msrb.mxu3 %v2779_v50  ;;  %1908 = vmatmul.bf16.vlgmr.msrb.gmra.mxu0 %v4484_v41  ;;  %v3194_v50 = vld [vmem:[#allocation5 + $0x448] sm:$0xf]  ;;  %v3067_v55 = vor.u32 %v3807_v49, %v3066_v47  ;;  %v3531_v30 = vor.u32 %v3923_v15, %v3530_v14  ;;  %v3919_v34 = vld [vmem:[#allocation5 + $0x6d4] sm:$0xf0]  ;;  %v2828_v14 = vld [vmem:[#allocation5 + $0x178] sm:$0xf0] }
  0xc3   : > { %1952 = vmatpush.bf16.msra.mxu0 %v3019_v51  ;;  %1921 = vmatmul.bf16.vlgmr.msrb.gmra.mxu1 %v4480_v37  ;;  %v3839_v51 = vld [vmem:[#allocation5 + $0x454] sm:$0xf0]  ;;  %v3777_v15 = vld [vmem:[#allocation5 + $0x26c] sm:$0xf]  ;;  %v3450_v24 = vld [vmem:[#allocation5 + $0x648] sm:$0xf] }
  0xc4   : > { %1965 = vmatpush.bf16.msra.mxu1 %v3147_v52  ;;  %1934 = vmatmul.bf16.vlgmr.msrb.gmra.mxu2 %v4468_v19  ;;  %v3322_v52 = vld [vmem:[#allocation5 + $0x548] sm:$0xf]  ;;  %v3195_v56 = vor.u32 %v3839_v51, %v3194_v50  ;;  %v3915_v49 = vld [vmem:[#allocation5 + $0x6b4] sm:$0xf0]  ;;  %v3721_v50 = vld [vmem:[#allocation5 + $0xac] sm:$0xf] }
  0xc5   : > { %1978 = vmatpush.bf16.msra.mxu2 %v3275_v53  ;;  %1947 = vmatmul.bf16.vlgmr.msrb.gmra.mxu3 %v4472_v22  ;;  %v3871_v53 = vld [vmem:[#allocation5 + $0x554] sm:$0xf0]  ;;  %v3434_v38 = vld [vmem:[#allocation5 + $0x628] sm:$0xf] }
  0xc6   : > { %1991 = vmatpush.bf16.msra.mxu3 %v3403_v57  ;;  %v2922_v57 = vld [vmem:[#allocation5 + $0x228] sm:$0xf]  ;;  %v3323_v60 = vor.u32 %v3871_v53, %v3322_v52  ;;  %v2732_v52 = vld [vmem:[#allocation5 + $0xb8] sm:$0xf0]  ;;  %v3753_v53 = vld [vmem:[#allocation5 + $0x1ac] sm:$0xf] }
  0xc7   : > { %1953 = vmatpush.bf16.msra.mxu0 %v3003_v63  ;;  %v3835_v63 = vld [vmem:[#allocation5 + $0x434] sm:$0xf0]  ;;  %v2923_v2 = vor.u32 %v3771_v58, %v2922_v57  ;;  %v2735_v58 = vor.u32 %v3721_v50, %v2732_v52 }
  0xc8   : > { %1966 = vmatpush.bf16.msra.mxu1 %v3131_v0  ;;  %v3306_v0 = vld [vmem:[#allocation5 + $0x528] sm:$0xf]  ;;  %v3179_v6 = vor.u32 %v3835_v63, %v3178_v62  ;;  %v3717_v62 = vld [vmem:[#allocation5 + $0x8c] sm:$0xf]  ;;  %v3895_v52 = vld [vmem:[#allocation5 + $0x614] sm:$0xf0] }
  0xc9   : > { %1979 = vmatpush.bf16.msra.mxu2 %v3259_v1  ;;  %v3867_v1 = vld [vmem:[#allocation5 + $0x534] sm:$0xf0] }
  0xca   : > { %1992 = vmatpush.bf16.msra.mxu3 %v3387_v5  ;;  %v3051_v5 = vor.u32 %v3803_v61, %v3050_v59  ;;  %v3307_v10 = vor.u32 %v3867_v1, %v3306_v0  ;;  %v3911_v61 = vld [vmem:[#allocation5 + $0x694] sm:$0xf0]  ;;  %v2716_v0 = vld [vmem:[#allocation5 + $0x98] sm:$0xf0]  ;;  %v3749_v1 = vld [vmem:[#allocation5 + $0x18c] sm:$0xf] }
  0xcb   : > { %1954 = vmatpush.bf16.msra.mxu0 %v2987_v11  ;;  %v3831_v11 = vld [vmem:[#allocation5 + $0x414] sm:$0xf0] }
  0xcc   : > { %1967 = vmatpush.bf16.msra.mxu1 %v3115_v12  ;;  %v3290_v12 = vld [vmem:[#allocation5 + $0x508] sm:$0xf]  ;;  %v3163_v26 = vor.u32 %v3831_v11, %v3162_v9  ;;  %v3907_v9 = vld [vmem:[#allocation5 + $0x674] sm:$0xf0] }
  0xcd   : > { %1980 = vmatpush.bf16.msra.mxu2 %v3243_v13  ;;  %v3863_v13 = vld [vmem:[#allocation5 + $0x514] sm:$0xf0] }
  0xce   : > { %1993 = vmatpush.bf16.msra.mxu3 %v3371_v17  ;;  %v2907_v17 = vor.u32 %v3767_v4, %v2906_v3  ;;  %v3781_v3 = vld [vmem:[#allocation5 + $0x28c] sm:$0xf]  ;;  %v2972_v4 = vld [vmem:[#allocation5 + $0x298] sm:$0xf0] }
  0xcf   : > { %1955 = vmatpush.bf16.msra.mxu0 %v2971_v27  ;;  %v3793_v27 = vld [vmem:[#allocation5 + $0x2ec] sm:$0xf]  ;;  %v2975_v11 = vor.u32 %v3781_v3, %v2972_v4  ;;  %v3276_v4 = vld [vmem:[#allocation5 + $0x4f8] sm:$0xf0] }
  0xd0   : > { %1968 = vmatpush.bf16.msra.mxu1 %v3099_v28  ;;  %v3020_v28 = vld [vmem:[#allocation5 + $0x2f8] sm:$0xf0] }
  0xd1   : > { %1981 = vmatpush.bf16.msra.mxu2 %v3227_v29  ;;  %v3291_v29 = vor.u32 %v3863_v13, %v3290_v12  ;;  %v3023_v36 = vor.u32 %v3793_v27, %v3020_v28  ;;  %v2700_v12 = vld [vmem:[#allocation5 + $0x78] sm:$0xf0]  ;;  %v3745_v13 = vld [vmem:[#allocation5 + $0x16c] sm:$0xf]  ;;  %v2959_v27 = vor.u32 %v3777_v15, %v2956_v16 }
  0xd2   : > { %1994 = vmatpush.bf16.msra.mxu3 %v3355_v33  ;;  %v3514_v33 = vld [vmem:[#allocation5 + $0x6c8] sm:$0xf]  ;;  %v2831_v23 = vor.u32 %v3745_v13, %v2828_v14  ;;  %v2684_v28 = vld [vmem:[#allocation5 + $0x58] sm:$0xf0] }
  0xd3   : > { %1956 = vmatpush.bf16.msra.mxu0 %v2955_v42  ;;  %v2876_v42 = vld [vmem:[#allocation5 + $0x1d8] sm:$0xf0]  ;;  %v3515_v45 = vor.u32 %v3919_v34, %v3514_v33 }
  0xd4   : > { %1969 = vmatpush.bf16.msra.mxu1 %v3083_v43  ;;  %v3789_v43 = vld [vmem:[#allocation5 + $0x2cc] sm:$0xf]  ;;  %v2879_v47 = vor.u32 %v3757_v39, %v2876_v42  ;;  %v3899_v39 = vld [vmem:[#allocation5 + $0x634] sm:$0xf0] }
  0xd5   : > { %1982 = vmatpush.bf16.msra.mxu2 %v3211_v44  ;;  %v3004_v44 = vld [vmem:[#allocation5 + $0x2d8] sm:$0xf0]  ;;  %v3705_v42 = vld [vmem:[#allocation5 + $0x2c] sm:$0xf]  ;;  %v3435_v50 = vor.u32 %v3899_v39, %v3434_v38 }
  0xd6   : > { %1995 = vmatpush.bf16.msra.mxu3 %v3339_v48  ;;  %v3498_v48 = vld [vmem:[#allocation5 + $0x6a8] sm:$0xf]  ;;  %v3007_v51 = vor.u32 %v3789_v43, %v3004_v44  ;;  %v3116_v38 = vld [vmem:[#allocation5 + $0x3b8] sm:$0xf0]  ;;  %v3849_v39 = vld [vmem:[#allocation5 + $0x4ac] sm:$0xf] }
  0xd7   : > { %1957 = vmatpush.bf16.msra.mxu0 %v2939_v54  ;;  %v2860_v54 = vld [vmem:[#allocation5 + $0x1b8] sm:$0xf0]  ;;  %v3499_v57 = vor.u32 %v3915_v49, %v3498_v48  ;;  %v3769_v48 = vld [vmem:[#allocation5 + $0x22c] sm:$0xf] }
  0xd8   : > { %1970 = vmatpush.bf16.msra.mxu1 %v3067_v55  ;;  %v3785_v55 = vld [vmem:[#allocation5 + $0x2ac] sm:$0xf]  ;;  %v2863_v59 = vor.u32 %v3753_v53, %v2860_v54  ;;  %v2924_v49 = vld [vmem:[#allocation5 + $0x238] sm:$0xf0] }
  0xd9   : > { %1983 = vmatpush.bf16.msra.mxu2 %v3195_v56  ;;  %v2988_v56 = vld [vmem:[#allocation5 + $0x2b8] sm:$0xf0] }
  0xda   : > { %1996 = vmatpush.bf16.msra.mxu3 %v3323_v60  ;;  %v3482_v60 = vld [vmem:[#allocation5 + $0x688] sm:$0xf]  ;;  %v2991_v63 = vor.u32 %v3785_v55, %v2988_v56  ;;  %v3701_v55 = vld [vmem:[#allocation5 + $0xc] sm:$0xf]  ;;  %v2652_v56 = vld [vmem:[#allocation5 + $0x18] sm:$0xf0] }
  0xdb   : > { %1958 = vmatpush.bf16.msra.mxu0 %v2923_v2  ;;  %v2844_v2 = vld [vmem:[#allocation5 + $0x198] sm:$0xf0] }
  0xdc   : > { %1971 = vmatpush.bf16.msra.mxu1 %v3051_v5  ;;  %v3483_v5 = vor.u32 %v3911_v61, %v3482_v60  ;;  %v2847_v7 = vor.u32 %v3749_v1, %v2844_v2  ;;  %v2780_v60 = vld [vmem:[#allocation5 + $0x118] sm:$0xf0]  ;;  %v3765_v61 = vld [vmem:[#allocation5 + $0x20c] sm:$0xf] }
  0xdd   : > { %1984 = vmatpush.bf16.msra.mxu2 %v3179_v6  ;;  %v2719_v6 = vor.u32 %v3717_v62, %v2716_v0  ;;  %v2908_v62 = vld [vmem:[#allocation5 + $0x218] sm:$0xf0]  ;;  %v3825_v0 = vld [vmem:[#allocation5 + $0x3ec] sm:$0xf] }
  0xde   : > { %1997 = vmatpush.bf16.msra.mxu3 %v3307_v10  ;;  %v3713_v10 = vld [vmem:[#allocation5 + $0x6c] sm:$0xf]  ;;  %v3148_v1 = vld [vmem:[#allocation5 + $0x3f8] sm:$0xf0]  ;;  %v2911_v13 = vor.u32 %v3765_v61, %v2908_v62 }
  0xdf   : > { %1959 = vmatpush.bf16.msra.mxu0 %v2907_v17  ;;  %v3467_v17 = vor.u32 %v3907_v9, %v3466_v8  ;;  %v2703_v21 = vor.u32 %v3713_v10, %v2700_v12  ;;  %v4502_v34 = vpop.f32.mrf.mxu0  ;;  %v3857_v2 = vld [vmem:[#allocation5 + $0x4ec] sm:$0xf]  ;;  %v2655_v8 = vor.u32 %v3701_v55, %v2652_v56  ;;  %v3151_v14 = vor.u32 %v3825_v0, %v3148_v1  ;;  %v3228_v56 = vld [vmem:[#allocation5 + $0x498] sm:$0xf0] }
  0xe0   : > { %1972 = vmatpush.bf16.msra.mxu1 %v3035_v25  ;;  %v3903_v25 = vld [vmem:[#allocation5 + $0x654] sm:$0xf0]  ;;  %v4504_v43 = vpop.f32.mrf.mxu1  ;;  %v3921_v10 = vld [vmem:[#allocation5 + $0x6ec] sm:$0xf]  ;;  %v3279_v15 = vor.u32 %v3857_v2, %v3276_v4  ;;  %v3084_v2 = vld [vmem:[#allocation5 + $0x378] sm:$0xf0] }
  0xe1   : > { %1985 = vmatpush.bf16.msra.mxu2 %v3163_v26  ;;  %v3709_v26 = vld [vmem:[#allocation5 + $0x4c] sm:$0xf]  ;;  %v3451_v33 = vor.u32 %v3903_v25, %v3450_v24  ;;  %v3260_v25 = vld [vmem:[#allocation5 + $0x4d8] sm:$0xf0] }
  0xe2   : > { %1998 = vmatpush.bf16.msra.mxu3 %v3291_v29  ;;  %1960 = vmatmul.bf16.vlgmr.msra.gmra.mxu0 %v4466_v18  ;;  %v3741_v29 = vld [vmem:[#allocation5 + $0x14c] sm:$0xf]  ;;  %v2687_v35 = vor.u32 %v3709_v26, %v2684_v28 }
  0xe3   : > { %2004 = vmatpush.bf16.msrb.mxu0 %v3531_v30  ;;  %1973 = vmatmul.bf16.vlgmr.msra.gmra.mxu1 %v4470_v20  ;;  %v2812_v30 = vld [vmem:[#allocation5 + $0x158] sm:$0xf0]  ;;  %v3885_v26 = vld [vmem:[#allocation5 + $0x5cc] sm:$0xf] }
  0xe4   : > { %2017 = vmatpush.bf16.msrb.mxu1 %v2767_v31  ;;  %1986 = vmatmul.bf16.vlgmr.msra.gmra.mxu2 %v4482_v40  ;;  %v3773_v31 = vld [vmem:[#allocation5 + $0x24c] sm:$0xf] }
  0xe5   : > { %2030 = vmatpush.bf16.msrb.mxu2 %v2895_v32  ;;  %1999 = vmatmul.bf16.vlgmr.msra.gmra.mxu3 %v4484_v41  ;;  %v2940_v32 = vld [vmem:[#allocation5 + $0x258] sm:$0xf0]  ;;  %v3917_v28 = vld [vmem:[#allocation5 + $0x6cc] sm:$0xf] }
  0xe6   : > { %2043 = vmatpush.bf16.msrb.mxu3 %v3023_v36  ;;  %v2815_v36 = vor.u32 %v3741_v29, %v2812_v30  ;;  %v2943_v44 = vor.u32 %v3773_v31, %v2940_v32  ;;  %v3516_v29 = vld [vmem:[#allocation5 + $0x6d8] sm:$0xf0]  ;;  %v3809_v1 = vld [vmem:[#allocation5 + $0x36c] sm:$0xf] }
  0xe7   : > { %2005 = vmatpush.bf16.msrb.mxu0 %v3515_v45  ;;  %v2668_v45 = vld [vmem:[#allocation5 + $0x38] sm:$0xf0] }
  0xe8   : > { %2018 = vmatpush.bf16.msrb.mxu1 %v2751_v46  ;;  %v3737_v46 = vld [vmem:[#allocation5 + $0x12c] sm:$0xf]  ;;  %v2671_v53 = vor.u32 %v3705_v42, %v2668_v45  ;;  %v1768_v12 = vpop.f32.mrf.mxu1  ;;  %v3519_v42 = vor.u32 %v3917_v28, %v3516_v29 }
  0xe9   : > { %2031 = vmatpush.bf16.msrb.mxu2 %v2879_v47  ;;  %v2796_v47 = vld [vmem:[#allocation5 + $0x138] sm:$0xf0]  ;;  %v3881_v45 = vld [vmem:[#allocation5 + $0x5ac] sm:$0xf] }
  0xea   : > { %2044 = vmatpush.bf16.msrb.mxu3 %v3007_v51  ;;  %v3418_v51 = vld [vmem:[#allocation5 + $0x608] sm:$0xf]  ;;  %v2799_v54 = vor.u32 %v3737_v46, %v2796_v47  ;;  %v3372_v46 = vld [vmem:[#allocation5 + $0x5b8] sm:$0xf0]  ;;  %v3913_v47 = vld [vmem:[#allocation5 + $0x6ac] sm:$0xf] }
  0xeb   : > { %2006 = vmatpush.bf16.msrb.mxu0 %v3499_v57  ;;  %v3733_v57 = vld [vmem:[#allocation5 + $0x10c] sm:$0xf]  ;;  %v3419_v3 = vor.u32 %v3895_v52, %v3418_v51  ;;  %v3375_v51 = vor.u32 %v3881_v45, %v3372_v46  ;;  %v3436_v46 = vld [vmem:[#allocation5 + $0x638] sm:$0xf0] }
  0xec   : > { %2019 = vmatpush.bf16.msrb.mxu1 %v2735_v58  ;;  %v2783_v9 = vor.u32 %v3733_v57, %v2780_v60  ;;  %v3813_v52 = vld [vmem:[#allocation5 + $0x38c] sm:$0xf]  ;;  %v3484_v60 = vld [vmem:[#allocation5 + $0x698] sm:$0xf0] }
  0xed   : > { %2032 = vmatpush.bf16.msrb.mxu2 %v2863_v59  ;;  %v2927_v59 = vor.u32 %v3769_v48, %v2924_v49  ;;  %v3500_v48 = vld [vmem:[#allocation5 + $0x6b8] sm:$0xf0]  ;;  %v3877_v57 = vld [vmem:[#allocation5 + $0x58c] sm:$0xf] }
  0xee   : > { %2045 = vmatpush.bf16.msrb.mxu3 %v2991_v63  ;;  %v3503_v55 = vor.u32 %v3913_v47, %v3500_v48  ;;  %v3897_v45 = vld [vmem:[#allocation5 + $0x62c] sm:$0xf] }
  0xef   : > { %2007 = vmatpush.bf16.msrb.mxu0 %v3483_v5  ;;  %v3889_v5 = vld [vmem:[#allocation5 + $0x5ec] sm:$0xf] }
  0xf0   : > { %2020 = vmatpush.bf16.msrb.mxu1 %v2719_v6  ;;  %v3404_v6 = vld [vmem:[#allocation5 + $0x5f8] sm:$0xf0] }
  0xf1   : > { %2033 = vmatpush.bf16.msrb.mxu2 %v2847_v7  ;;  %v4506_v58 = vpop.f32.mrf.mxu2  ;;  %v1755_v7 = vpop.f32.mrf.mxu0  ;;  %v3407_v16 = vor.u32 %v3889_v5, %v3404_v6  ;;  %v3212_v5 = vld [vmem:[#allocation5 + $0x478] sm:$0xf0]  ;;  %v3873_v6 = vld [vmem:[#allocation5 + $0x56c] sm:$0xf] }
  0xf2   : > { %2046 = vmatpush.bf16.msrb.mxu3 %v2975_v11  ;;  %v4508_v63 = vpop.f32.mrf.mxu3  ;;  %v3532_v11 = vld [vmem:[#allocation5 + $0x6f8] sm:$0xf0] }
  0xf3   : > { %2008 = vmatpush.bf16.msrb.mxu0 %v3467_v17  ;;  %v3821_v17 = vld [vmem:[#allocation5 + $0x3cc] sm:$0xf]  ;;  %v3535_v24 = vor.u32 %v3921_v10, %v3532_v11  ;;  %v3340_v7 = vld [vmem:[#allocation5 + $0x578] sm:$0xf0]  ;;  %v3087_v10 = vor.u32 %v3809_v1, %v3084_v2 }
  0xf4   : > { %2021 = vmatpush.bf16.msrb.mxu1 %v2703_v21  ;;  %v3132_v21 = vld [vmem:[#allocation5 + $0x3d8] sm:$0xf0]  ;;  %v3343_v12 = vor.u32 %v3873_v6, %v3340_v7  ;;  %v3930_v6 = vld [vmem:[#allocation8 + $0x30] sm:$0xff] }
  0xf5   : > { %2034 = vmatpush.bf16.msrb.mxu2 %v2831_v23  ;;  %v3853_v23 = vld [vmem:[#allocation5 + $0x4cc] sm:$0xf]  ;;  %v3135_v31 = vor.u32 %v3821_v17, %v3132_v21  ;;  %v3196_v21 = vld [vmem:[#allocation5 + $0x458] sm:$0xf0] }
  0xf6   : > { %2047 = vmatpush.bf16.msrb.mxu3 %v2959_v27  ;;  %v3388_v27 = vld [vmem:[#allocation5 + $0x5d8] sm:$0xf0] }
  0xf7   : > { %2009 = vmatpush.bf16.msrb.mxu0 %v3451_v33  ;;  %v3263_v33 = vor.u32 %v3853_v23, %v3260_v25  ;;  %v3869_v23 = vld [vmem:[#allocation5 + $0x54c] sm:$0xf] }
  0xf8   : > { %2022 = vmatpush.bf16.msrb.mxu1 %v2687_v35  ;;  %v3391_v35 = vor.u32 %v3885_v26, %v3388_v27  ;;  %v3901_v25 = vld [vmem:[#allocation5 + $0x64c] sm:$0xf]  ;;  %v3452_v26 = vld [vmem:[#allocation5 + $0x658] sm:$0xf0] }
  0xf9   : > { %2035 = vmatpush.bf16.msrb.mxu2 %v2815_v36  ;;  %v1781_v30 = vpop.f32.mrf.mxu2  ;;  %v3817_v36 = vld [vmem:[#allocation5 + $0x3ac] sm:$0xf] }
  0xfa   : > { %2048 = vmatpush.bf16.msrb.mxu3 %v2943_v44  ;;  %v1794_v32 = vpop.f32.mrf.mxu3  ;;  %v3244_v44 = vld [vmem:[#allocation5 + $0x4b8] sm:$0xf0]  ;;  %v3119_v49 = vor.u32 %v3817_v36, %v3116_v38  ;;  %v3833_v36 = vld [vmem:[#allocation5 + $0x42c] sm:$0xf]  ;;  %v3455_v38 = vor.u32 %v3901_v25, %v3452_v26  ;;  %v3934_v26 = vld [vmem:[#allocation8 + $0x50] sm:$0xff] }
  0xfb   : > { %2010 = vmatpush.bf16.msrb.mxu0 %v3435_v50  ;;  %v3247_v50 = vor.u32 %v3849_v39, %v3244_v44  ;;  %v3180_v39 = vld [vmem:[#allocation5 + $0x438] sm:$0xf0] }
  0xfc   : > { %2023 = vmatpush.bf16.msrb.mxu1 %v2671_v53  ;;  %v3100_v53 = vld [vmem:[#allocation5 + $0x398] sm:$0xf0]  ;;  %v3183_v48 = vor.u32 %v3833_v36, %v3180_v39  ;;  %v3924_v36 = vld [vmem:[#allocation8] sm:$0xff] }
  0xfd   : > { %2036 = vmatpush.bf16.msrb.mxu2 %v2799_v54  ;;  %v3845_v54 = vld [vmem:[#allocation5 + $0x48c] sm:$0xf]  ;;  %v3308_v44 = vld [vmem:[#allocation5 + $0x538] sm:$0xf0] }
  0xfe   : > { %2049 = vmatpush.bf16.msrb.mxu3 %v2927_v59  ;;  %v3909_v59 = vld [vmem:[#allocation5 + $0x68c] sm:$0xf] }
  0xff   : > { %2011 = vmatpush.bf16.msrb.mxu0 %v3419_v3  ;;  %v4514_v61 = vpop.f32.mrf.mxu0  ;;  %v3841_v3 = vld [vmem:[#allocation5 + $0x46c] sm:$0xf]  ;;  %v3487_v4 = vor.u32 %v3909_v59, %v3484_v60  ;;  %v3420_v59 = vld [vmem:[#allocation5 + $0x618] sm:$0xf0] }
 0x100   : > { %2024 = vmatpush.bf16.msrb.mxu1 %v2655_v8  ;;  %v4516_v62 = vpop.f32.mrf.mxu1  ;;  %v3905_v8 = vld [vmem:[#allocation5 + $0x66c] sm:$0xf]  ;;  %v3215_v11 = vor.u32 %v3841_v3, %v3212_v5  ;;  %v3931_v3 = vld [vmem:[#allocation8 + $0x38] sm:$0xff] }
 0x101   : > { %2037 = vmatpush.bf16.msrb.mxu2 %v2783_v9  ;;  %v3468_v9 = vld [vmem:[#allocation5 + $0x678] sm:$0xf0] }
 0x102   : > { %2050 = vmatpush.bf16.msrb.mxu3 %v2911_v13  ;;  %2012 = vmatmul.bf16.vlgmr.msrb.gmra.mxu0 %v4480_v37  ;;  %v3805_v13 = vld [vmem:[#allocation5 + $0x34c] sm:$0xf]  ;;  %v3471_v17 = vor.u32 %v3905_v8, %v3468_v9  ;;  %v3939_v5 = vld [vmem:[#allocation8 + $0x78] sm:$0xff]  ;;  %v3938_v8 = vld [vmem:[#allocation8 + $0x70] sm:$0xff] }
 0x103   : > { %2056 = vmatpush.bf16.msra.mxu0 %v3151_v14  ;;  %2025 = vmatmul.bf16.vlgmr.msrb.gmra.mxu1 %v4468_v19  ;;  %v3231_v19 = vor.u32 %v3845_v54, %v3228_v56  ;;  %v3068_v14 = vld [vmem:[#allocation5 + $0x358] sm:$0xf0]  ;;  %v3439_v54 = vor.u32 %v3897_v45, %v3436_v46  ;;  %v3861_v56 = vld [vmem:[#allocation5 + $0x50c] sm:$0xf] }
 0x104   : > { %2069 = vmatpush.bf16.msra.mxu1 %v3279_v15  ;;  %2038 = vmatmul.bf16.vlgmr.msrb.gmra.mxu2 %v4472_v22  ;;  %v3356_v22 = vld [vmem:[#allocation5 + $0x598] sm:$0xf0]  ;;  %v3837_v15 = vld [vmem:[#allocation5 + $0x44c] sm:$0xf]  ;;  %v3071_v28 = vor.u32 %v3805_v13, %v3068_v14  ;;  %v3936_v14 = vld [vmem:[#allocation8 + $0x60] sm:$0xff] }
 0x105   : > { %2082 = vmatpush.bf16.msra.mxu2 %v3407_v16  ;;  %2051 = vmatmul.bf16.vlgmr.msrb.gmra.mxu3 %v4466_v18  ;;  %v3103_v18 = vor.u32 %v3813_v52, %v3100_v53  ;;  %v3359_v0 = vor.u32 %v3877_v57, %v3356_v22  ;;  %v3829_v52 = vld [vmem:[#allocation5 + $0x40c] sm:$0xf]  ;;  %v3292_v57 = vld [vmem:[#allocation5 + $0x518] sm:$0xf0] }
 0x106   : > { %2095 = vmatpush.bf16.msra.mxu3 %v3535_v24  ;;  %v3324_v24 = vld [vmem:[#allocation5 + $0x558] sm:$0xf0]  ;;  %v3893_v22 = vld [vmem:[#allocation5 + $0x60c] sm:$0xf]  ;;  %v3295_v1 = vor.u32 %v3861_v56, %v3292_v57 }
 0x107   : > { %2057 = vmatpush.bf16.msra.mxu0 %v3135_v31  ;;  %v4518_v16 = vpop.f32.mrf.mxu2  ;;  %v1807_v29 = vpop.f32.mrf.mxu0  ;;  %v3199_v31 = vor.u32 %v3837_v15, %v3196_v21  ;;  %v3327_v32 = vor.u32 %v3869_v23, %v3324_v24  ;;  %v3423_v2 = vor.u32 %v3893_v22, %v3420_v59  ;;  %v3929_v9 = vld [vmem:[#allocation8 + $0x28] sm:$0xff]  ;;  %v3947_v21 = vld [vmem:[#allocation8 + $0xb8] sm:$0xff]  ;;  %v3926_v23 = vld [vmem:[#allocation8 + $0x10] sm:$0xff] }
 0x108   : > { %2070 = vmatpush.bf16.msra.mxu1 %v3263_v33  ;;  %v4520_v27 = vpop.f32.mrf.mxu3  ;;  %v1820_v30 = vpop.f32.mrf.mxu1  ;;  %v3801_v33 = vld [vmem:[#allocation5 + $0x32c] sm:$0xf]  ;;  %v3940_v59 = vld [vmem:[#allocation8 + $0x80] sm:$0xff] }
 0x109   : > { %2083 = vmatpush.bf16.msra.mxu2 %v3391_v35  ;;  %v3052_v35 = vld [vmem:[#allocation5 + $0x338] sm:$0xf0]  ;;  %v3933_v30 = vld [vmem:[#allocation8 + $0x48] sm:$0xff] }
 0x10a   : > { %2096 = vmatpush.bf16.msra.mxu3 %v3519_v42  ;;  %v3865_v42 = vld [vmem:[#allocation5 + $0x52c] sm:$0xf]  ;;  %v3055_v47 = vor.u32 %v3801_v33, %v3052_v35 }
 0x10b   : > { %2058 = vmatpush.bf16.msra.mxu0 %v3119_v49  ;;  %v3311_v49 = vor.u32 %v3865_v42, %v3308_v44  ;;  %v3941_v22 = vld [vmem:[#allocation8 + $0x88] sm:$0xff] }
 0x10c   : > { %2071 = vmatpush.bf16.msra.mxu1 %v3247_v50  ;;  %v3797_v50 = vld [vmem:[#allocation5 + $0x30c] sm:$0xf] }
 0x10d   : > { %2084 = vmatpush.bf16.msra.mxu2 %v3375_v51  ;;  %v3036_v51 = vld [vmem:[#allocation5 + $0x318] sm:$0xf0] }
 0x10e   : > { %2097 = vmatpush.bf16.msra.mxu3 %v3503_v55  ;;  %v3164_v55 = vld [vmem:[#allocation5 + $0x418] sm:$0xf0] }
 0x10f   : > { %2059 = vmatpush.bf16.msra.mxu0 %v3103_v18  ;;  %v1833_v53 = vpop.f32.mrf.mxu2  ;;  %v4522_v18 = vld [vmem:[#allocation7] sm:$0xf] }
 0x110   : > { %2072 = vmatpush.bf16.msra.mxu1 %v3231_v19  ;;  %v1846_v60 = vpop.f32.mrf.mxu3  ;;  %v3039_v19 = vor.u32 %v3797_v50, %v3036_v51  ;;  %v3944_v51 = vld [vmem:[#allocation8 + $0xa0] sm:$0xff] }
 0x111   : > { %2085 = vmatpush.bf16.msra.mxu2 %v3359_v0  ;;  %v3167_v0 = vor.u32 %v3829_v52, %v3164_v55  ;;  %v3942_v55 = vld [vmem:[#allocation8 + $0x90] sm:$0xff] }
 0x112   : > { %2098 = vmatpush.bf16.msra.mxu3 %v3487_v4  ;;  %v591_v4 = vperm.slane %v4522_v18, 0 }
 0x113   : > { %2060 = vmatpush.bf16.msra.mxu0 %v3087_v10 }
 0x114   : > { %2073 = vmatpush.bf16.msra.mxu1 %v3215_v11  ;;  %v1754_v7 = vadd.f32 %v4502_v34, %v591_v4  ;;  %v3937_v11 = vld [vmem:[#allocation8 + $0x68] sm:$0xff]  ;;  %v3954_v4 = vld [vmem:[#allocation8 + $0xf0] sm:$0xff] }
 0x115   : > { %2086 = vmatpush.bf16.msra.mxu2 %v3343_v12  ;;  %v3928_v12 = vld [vmem:[#allocation8 + $0x20] sm:$0xff] }
 0x116   : > { %2099 = vmatpush.bf16.msra.mxu3 %v3471_v17  ;;  %v1767_v10 = vadd.f32 %v4504_v43, %v1754_v7  ;;  %v592_v43 = vperm.slane %v4522_v18, 1 }
 0x117   : > { %2061 = vmatpush.bf16.msra.mxu0 %v3071_v28 }
 0x118   : > { %2074 = vmatpush.bf16.msra.mxu1 %v3199_v31  ;;  %v1780_v34 = vadd.f32 %v4506_v58, %v1767_v10  ;;  %v1845_v28 = vadd.f32 %v4520_v27, %v592_v43  ;;  %v3949_v43 = vld [vmem:[#allocation8 + $0xc8] sm:$0xff] }
 0x119   : > { %2087 = vmatpush.bf16.msra.mxu2 %v3327_v32  ;;  %v3946_v32 = vld [vmem:[#allocation8 + $0xb0] sm:$0xff] }
 0x11a   : > { %2100 = vmatpush.bf16.msra.mxu3 %v3455_v38  ;;  %v3932_v38 = vld [vmem:[#allocation8 + $0x40] sm:$0xff] }
 0x11b   : > { %2062 = vmatpush.bf16.msra.mxu0 %v3055_v47  ;;  %v3945_v47 = vld [vmem:[#allocation8 + $0xa8] sm:$0xff] }
 0x11c   : > { %2075 = vmatpush.bf16.msra.mxu1 %v3183_v48 }
 0x11d   : > { %2088 = vmatpush.bf16.msra.mxu2 %v3311_v49 }
 0x11e   : > { %2101 = vmatpush.bf16.msra.mxu3 %v3439_v54  ;;  %v3943_v54 = vld [vmem:[#allocation8 + $0x98] sm:$0xff] }
 0x11f   : > { %2063 = vmatpush.bf16.msra.mxu0 %v3039_v19  ;;  %v1857_v13 = vpop.f32.mrf.mxu0 }
 0x120   : > { %2076 = vmatpush.bf16.msra.mxu1 %v3167_v0  ;;  %v1858_v35 = vadd.f32 %v1857_v13, %v1845_v28  ;;  %v593_v0 = vperm.slane %v4522_v18, 2 }
 0x121   : > { %2089 = vmatpush.bf16.msra.mxu2 %v3295_v1 }
 0x122   : > { %2102 = vmatpush.bf16.msra.mxu3 %v3423_v2  ;;  %2064 = vmatmul.bf16.vlgmr.msra.gmra.mxu0 %v4470_v20  ;;  %v1870_v20 = vpop.f32.mrf.mxu1  ;;  %v3955_v2 = vld [vmem:[#allocation8 + $0xf8] sm:$0xff] }
 0x123   : > { %2372 = vmatpush.bf16.msrb.mxu0 %v3931_v3  ;;  %2077 = vmatmul.bf16.vlgmr.msra.gmra.mxu1 %v4482_v40  ;;  %v3927_v40 = vld [vmem:[#allocation8 + $0x18] sm:$0xff]  ;;  %v1871_v39 = vadd.f32 %v1870_v20, %v1858_v35 }
 0x124   : > { %2384 = vmatpush.bf16.msrb.mxu1 %v3939_v5  ;;  %2090 = vmatmul.bf16.vlgmr.msra.gmra.mxu2 %v4484_v41  ;;  %v1793_v41 = vadd.f32 %v4508_v63, %v1780_v34  ;;  %v3925_v63 = vld [vmem:[#allocation8 + $0x8] sm:$0xff]  ;;  %v3951_v34 = vld [vmem:[#allocation8 + $0xd8] sm:$0xff] }
 0x125   : > { %2103 = vmatmul.bf16.vlgmr.msra.gmra.mxu3 %v4480_v37  ;;  %v3935_v37 = vld [vmem:[#allocation8 + $0x58] sm:$0xff]  ;;  %2396 = vmatpush.bf16.msrb.mxu2 %v3947_v21 }
 0x126   : > { %v1806_v25 = vadd.f32 %v4514_v61, %v1793_v41  ;;  %2408 = vmatpush.bf16.msrb.mxu3 %v3955_v2  ;;  %v3950_v41 = vld [vmem:[#allocation8 + $0xd0] sm:$0xff]  ;;  %v4059_v2 = vld [vmem:[%s4586_s6] ss:$0 sm:$0xff] }
 0x127   : > { %2373 = vmatpush.bf16.msrb.mxu0 %v3930_v6  ;;  %v1883_v15 = vpop.f32.mrf.mxu2  ;;  %v1859_v24 = vpop.f32.mrf.mxu0 }
 0x128   : > { %2385 = vmatpush.bf16.msrb.mxu1 %v3938_v8  ;;  %v1896_v17 = vpop.f32.mrf.mxu3  ;;  %v1819_v29 = vadd.f32 %v4516_v62, %v1806_v25  ;;  %v1884_v42 = vadd.f32 %v1883_v15, %v1871_v39  ;;  %v3948_v25 = vld [vmem:[#allocation8 + $0xc0] sm:$0xff] }
 0x129   : > { %2397 = vmatpush.bf16.msrb.mxu2 %v3946_v32 }
 0x12a   : > { %v1872_v58 = vpop.f32.mrf.mxu1  ;;  %v1832_v61 = vadd.f32 %v4518_v16, %v1819_v29  ;;  %v1897_v62 = vadd.f32 %v1896_v17, %v1884_v42  ;;  %2409 = vmatpush.bf16.msrb.mxu3 %v3954_v4  ;;  %v594_v29 = vperm.slane %v4522_v18, 3  ;;  %v3962_v18 = vld [vmem:[#allocation10 + $0x30] sm:$0xff] }
 0x12b   : > { %2374 = vmatpush.bf16.msrb.mxu0 %v3929_v9  ;;  %v3953_v9 = vld [vmem:[#allocation8 + $0xe8] sm:$0xff] }
 0x12c   : > { %2386 = vmatpush.bf16.msrb.mxu1 %v3937_v11  ;;  %v2108_v27 = vmax.f32 %v1832_v61, 0.0 }
 0x12d   : > { %2398 = vmatpush.bf16.msrb.mxu2 %v3945_v47 }
 0x12e   : > { %2410 = vmatpush.bf16.msrb.mxu3 %v3953_v9 }
 0x12f   : > { %2375 = vmatpush.bf16.msrb.mxu0 %v3928_v12  ;;  %v1885_v31 = vpop.f32.mrf.mxu2  ;;  %v3952_v12 = vld [vmem:[#allocation8 + $0xe0] sm:$0xff] }
 0x130   : > { %2387 = vmatpush.bf16.msrb.mxu1 %v3936_v14  ;;  %v1898_v33 = vpop.f32.mrf.mxu3 }
 0x131   : > { %2399 = vmatpush.bf16.msrb.mxu2 %v3944_v51  ;;  %v3959_v51 = vld [vmem:[#allocation10 + $0x18] sm:$0xff] }
 0x132   : > { %2411 = vmatpush.bf16.msrb.mxu3 %v3952_v12 }
 0x133   : > { %2376 = vmatpush.bf16.msrb.mxu0 %v3927_v40 }
 0x134   : > { %2388 = vmatpush.bf16.msrb.mxu1 %v3935_v37 }
 0x135   : > { %2400 = vmatpush.bf16.msrb.mxu2 %v3943_v54  ;;  %v4058_v54 = vld [vmem:[%s4584_s4] ss:$0 sm:$0xff] }
 0x136   : > { %2412 = vmatpush.bf16.msrb.mxu3 %v3951_v34 }
 0x137   : > { %2377 = vmatpush.bf16.msrb.mxu0 %v3926_v23 }
 0x138   : > { %2389 = vmatpush.bf16.msrb.mxu1 %v3934_v26 }
 0x139   : > { %2401 = vmatpush.bf16.msrb.mxu2 %v3942_v55 }
 0x13a   : > { %2413 = vmatpush.bf16.msrb.mxu3 %v3950_v41 }
 0x13b   : > { %2378 = vmatpush.bf16.msrb.mxu0 %v3925_v63 }
 0x13c   : > { %2390 = vmatpush.bf16.msrb.mxu1 %v3933_v30 }
 0x13d   : > { %2402 = vmatpush.bf16.msrb.mxu2 %v3941_v22 }
 0x13e   : > { %2414 = vmatpush.bf16.msrb.mxu3 %v3949_v43 }
 0x13f   : > { %2379 = vmatpush.bf16.msrb.mxu0 %v3924_v36  ;;  %v1909_v44 = vpop.f32.mrf.mxu0 }
 0x140   : > { %2391 = vmatpush.bf16.msrb.mxu1 %v3932_v38  ;;  %v1910_v45 = vadd.f32 %v1909_v44, %v1897_v62  ;;  %v1922_v46 = vpop.f32.mrf.mxu1 }
 0x141   : > { %2403 = vmatpush.bf16.msrb.mxu2 %v3940_v59 }
 0x142   : > { %2380 = vmatmul.f32.vlgmr.msrb.gmra.mxu0 %v2108_v27  ;;  %v1923_v48 = vadd.f32 %v1922_v46, %v1910_v45  ;;  %2415 = vmatpush.bf16.msrb.mxu3 %v3948_v25 }
 0x144   : > { %v2109_v49 = vmax.f32 %v1923_v48, 0.0  ;;  %v3963_v48 = vld [vmem:[#allocation10 + $0x38] sm:$0xff] }
 0x145   : > { %2489 = vmatpush.bf16.msra.mxu0 %v3963_v48 }
 0x146   : > { %2392 = vmatmul.f32.vlgmr.msrb.gmra.mxu1 %v2109_v49  ;;  %v3961_v49 = vld [vmem:[#allocation10 + $0x28] sm:$0xff] }
 0x147   : > { %v1935_v50 = vpop.f32.mrf.mxu2  ;;  %v1911_v52 = vpop.f32.mrf.mxu0 }
 0x148   : > { %v1948_v16 = vpop.f32.mrf.mxu3  ;;  %v1924_v53 = vpop.f32.mrf.mxu1  ;;  %v1936_v5 = vadd.f32 %v1935_v50, %v593_v0  ;;  %v3960_v50 = vld [vmem:[#allocation10 + $0x20] sm:$0xff]  ;;  %v3957_v52 = vld [vmem:[#allocation10 + $0x8] sm:$0xff] }
 0x149   : > { %2490 = vmatpush.bf16.msra.mxu0 %v3962_v18  ;;  %v3956_v53 = vld [vmem:[#allocation10] sm:$0xff] }
 0x14a   : > { %v1949_v8 = vadd.f32 %v1948_v16, %v1936_v5  ;;  %v3958_v16 = vld [vmem:[#allocation10 + $0x10] sm:$0xff] }
 0x14d   : > { %2491 = vmatpush.bf16.msra.mxu0 %v3961_v49 }
 0x14f   : > { %v1937_v56 = vpop.f32.mrf.mxu2 }
 0x150   : > { %v1950_v57 = vpop.f32.mrf.mxu3 }
 0x151   : > { %2492 = vmatpush.bf16.msra.mxu0 %v3960_v50 }
 0x155   : > { %2493 = vmatpush.bf16.msra.mxu0 %v3959_v51 }
 0x159   : > { %2494 = vmatpush.bf16.msra.mxu0 %v3958_v16 }
 0x15d   : > { %2495 = vmatpush.bf16.msra.mxu0 %v3957_v52 }
 0x15f   : > { %v1961_v60 = vpop.f32.mrf.mxu0 }
 0x160   : > { %v1974_v19 = vpop.f32.mrf.mxu1  ;;  %v1962_v13 = vadd.f32 %v1961_v60, %v1949_v8 }
 0x161   : > { %2496 = vmatpush.bf16.msra.mxu0 %v3956_v53 }
 0x162   : > { %v1975_v20 = vadd.f32 %v1974_v19, %v1962_v13 }
 0x167   : > { %v1987_v1 = vpop.f32.mrf.mxu2  ;;  %v1963_v6 = vpop.f32.mrf.mxu0 }
 0x168   : > { %v2000_v3 = vpop.f32.mrf.mxu3  ;;  %v1976_v7 = vpop.f32.mrf.mxu1  ;;  %v1988_v14 = vadd.f32 %v1987_v1, %v1975_v20 }
 0x16a   : > { %v2001_v40 = vadd.f32 %v2000_v3, %v1988_v14 }
 0x16f   : > { %v1989_v10 = vpop.f32.mrf.mxu2 }
 0x170   : > { %v2002_v11 = vpop.f32.mrf.mxu3 }
 0x17f   : > { %v2013_v15 = vpop.f32.mrf.mxu0 }
 0x180   : > { %v2014_v37 = vadd.f32 %v2013_v15, %v2001_v40  ;;  %v2026_v17 = vpop.f32.mrf.mxu1 }
 0x181   : > { %v2027_v30 = vadd.f32 %v2026_v17, %v594_v29 }
 0x182   : > { %v2110_v21 = vmax.f32 %v2014_v37, 0.0 }
 0x184   : > { %2404 = vmatmul.f32.vlgmr.msrb.gmra.mxu2 %v2110_v21 }
 0x187   : > { %v2039_v23 = vpop.f32.mrf.mxu2  ;;  %v2015_v58 = vpop.f32.mrf.mxu0 }
 0x188   : > { %v2052_v24 = vpop.f32.mrf.mxu3  ;;  %v2028_v26 = vpop.f32.mrf.mxu1  ;;  %v2040_v31 = vadd.f32 %v2039_v23, %v2027_v30 }
 0x18a   : > { %v2053_v32 = vadd.f32 %v2052_v24, %v2040_v31 }
 0x18f   : > { %v2041_v28 = vpop.f32.mrf.mxu2 }
 0x190   : > { %v2054_v63 = vpop.f32.mrf.mxu3 }
 0x19f   : > { %v2065_v33 = vpop.f32.mrf.mxu0 }
 0x1a0   : > { %v2078_v35 = vpop.f32.mrf.mxu1  ;;  %v2066_v36 = vadd.f32 %v2065_v33, %v2053_v32 }
 0x1a2   : > { %v2079_v61 = vadd.f32 %v2078_v35, %v2066_v36 }
 0x1a7   : > { %v2091_v38 = vpop.f32.mrf.mxu2  ;;  %v2067_v42 = vpop.f32.mrf.mxu0 }
 0x1a8   : > { %v2092_v39 = vadd.f32 %v2091_v38, %v2079_v61  ;;  %v2104_v27 = vpop.f32.mrf.mxu3  ;;  %v2080_v62 = vpop.f32.mrf.mxu1 }
 0x1aa   : > { %v2105_v44 = vadd.f32 %v2104_v27, %v2092_v39 }
 0x1ac   : > { %v2111_v45 = vmax.f32 %v2105_v44, 0.0 }
 0x1ae   : > { %2416 = vmatmul.f32.vlgmr.msrb.gmra.mxu3 %v2111_v45 }
 0x1af   : > { %v2093_v46 = vpop.f32.mrf.mxu2 }
 0x1b0   : > { %v2106_v47 = vpop.f32.mrf.mxu3 }
 0x1bf   : > { %v2381_v55 = vpop.f32.mrf.mxu0 }
 0x1c0   : > { %v2382_v57 = vadd.f32 %v4058_v54, %v2381_v55 }
 0x1c3   : > { %v2393_v56 = vpop.f32.mrf.mxu1 }
 0x1c4   : > { %v2394_v59 = vadd.f32 %v2393_v56, %v2382_v57 }
 0x207   : > { %v2405_v22 = vpop.f32.mrf.mxu2 }
 0x208   : > { %v2406_v60 = vadd.f32 %v2405_v22, %v2394_v59 }
 0x231   : > { %v2417_v19 = vpop.f32.mrf.mxu3 }
 0x232   : > { %v2418_v0 = vadd.f32 %v2417_v19, %v2406_v60 }
 0x234   : > { %v2420_v1 = vmax.f32 %v2418_v0, 0.0 }
 0x236   : > { %2497 = vmatmul.f32.vlgmr.msra.gmra.mxu0 %v2420_v1 }
 0x2b3   : > { %v2498_v3 = vpop.f32.mrf.mxu0 }
 0x2b4   : > { %v2499_v4 = vadd.f32 %v4059_v2, %v2498_v3 }
 0x2b6   : > { %2501 = vst [vmem:[%s360_s19] sm:$0xff] %v2499_v4 }
 0x2b7   : > { %4237 = shalt.err (!%p4234_p9)
}
 0x2b8   : > { %3985 = dma.vmem_to_hbm [thread:$0]  (%p4417_p4), %s2516_s10, 128, %s2518_s11, %s2503_s29  }
 0x2b9 PF: > { %s2529_s15 = sand.u32 1, %s4272_s24   ;;  %p4600_p10 = scmp.ge.s32.totalorder %s4284_s27, 2 }
 0x2ba   : > { %s2530_s30 = scalar_lea.sflag [#allocation4], %s2529_s15 }
 0x2bb   : > { %p4005_p11 = pnand %p4600_p10, %p4421_p6 }
 0x2bd   : > { %p4006_p13 = pneg %p4005_p11 }
 0x2bf   : > { %4267 = dma.done.wait (%p4006_p13), %s2530_s30, 128  }
 0x2c0   : > { %4269 = vsyncadd (%p4006_p13), %s2530_s30, 4294967168  ;;  %p22_p0 = scmp.ge.s32.totalorder %s4395_s17, 4   ;;  %s4601_s24 = smov %s4276_s25 }
 0x2c1   : > { %s4602_s25 = smov %s4280_s26  ;;  %s4603_s26 = smov %s4406_s22 }
 0x2c2   : > { %s4604_s27 = smov %s4395_s17  ;;  %24 = sbr.rel (!%p22_p0) target bundleno = 11 (0xb), region = 109 }
 0x2c7   :  { %2536 = vsyncpa [#allocation3], 1 }
 0x2c8   :  { %2538 = vsyncpa [#allocation3 + $0x1], 1 }
 0x2c9   :  { %2539 = vsyncpa [#allocation6], 1 }
 0x2ca   :  { %2540 = vsyncpa [#allocation9], 1 }
 0x2cb   :  { %2541 = vsyncpa [#allocation4], 1 }
 0x2cc   :  { %2543 = vsyncpa [#allocation4 + $0x1], 1 }

</bundles_post_ra>
